<compile_context>
chip_gen: v7x
topology: tpu7x:2x2x1
jax: 0.10.0
libtpu: 0.0.40
codegen_flags: <defaults>
</compile_context>

<pallas_src>
import functools
import math

import jax
import jax.numpy as jnp
from jax import lax
from jax.experimental import pallas as pl
from jax.experimental.pallas import tpu as pltpu

NEG_SLOPE = 0.01  # PyTorch LeakyReLU / F.leaky_relu default


def _leaky(x):
    return jnp.where(x >= 0, x, NEG_SLOPE * x)


def _relu(x):
    return jnp.maximum(x, 0.0)


def _abs_pow(x, moment: int):
    """|x|**moment for a static Python int moment (never lowers to lax.pow)."""
    if moment == 1:
        return jnp.abs(x)
    if moment == 2:
        return x * x
    ax = jnp.abs(x)
    r = ax
    for _ in range(moment - 1):
        r = r * ax
    return r


def build_operators(adj):
    """Stacked *transposed* diffusion operators, built once in plain XLA.

    ops_t[k] = OP_k^T with OP = [A_hat, A_hat^2, A_hat^3, Psi_1, Psi_2, Psi_3]
    (f32 products, then cast to bf16). With the transposed/feature-major
    kernel layout, chan_k^T = h^T @ ops_t[k] -- 6 independent matmuls per
    layer against the same h.

    NOTE: the shared row/col normalization of (A+I) and the column-degree P
    assume a symmetric adjacency (as in the original model).
    """
    f32 = jnp.float32
    adj = adj.astype(f32)
    N = adj.shape[0]
    eye = jnp.eye(N, dtype=f32)
    At = adj + eye
    A_hat = (lax.rsqrt(At.sum(1, keepdims=True)) * At
             * lax.rsqrt(At.sum(0, keepdims=True)))
    A2 = A_hat @ A_hat
    A3 = A2 @ A_hat
    deg = jnp.maximum(adj.sum(0, keepdims=True), 1e-12)
    P = 0.5 * (eye + adj / deg)
    P2 = P @ P
    P4 = P2 @ P2
    P8 = P4 @ P4
    ops = jnp.stack([A_hat, A2, A3, P - P2, P2 - P4, P4 - P8])   # [6, N, N]
    return jnp.transpose(ops, (0, 2, 1)).astype(jnp.bfloat16)


def _vmem_limit_bytes(need_bytes):
    try:
        cap = pltpu.get_tpu_info().vmem_capacity_bytes
    except Exception:  # pragma: no cover - conservative fallback
        cap = 64 * 1024 * 1024
    # 2x headroom over the estimated live set (compiler scratch, spills),
    # floored at 32 MiB, never more than 7/8 of physical / 100 MiB.
    limit = max(2 * int(need_bytes) + (8 << 20), 32 << 20)
    return int(min(limit, cap * 7 // 8, 100 << 20))


# ----------------------------------------------------------------------------
# Fused Pallas kernel (feature-major / transposed layout, everything [*, N]):
#   in_proj -> n_layers x SCTConv -> mlp1 (slab-accumulated) -> mlp2 -> minmax
# ----------------------------------------------------------------------------
def _gnn_kernel(xT_ref, ops_ref,
                w_in_ref, b_in_ref, a_ref, w1_ref, b1_ref, w2_ref, b2_ref,
                wm1_ref, bm1_ref, wm2_ref, bm2_ref,
                out_ref, *, n_layers, moment):
    bf16 = jnp.bfloat16

    def dot(a, b):
        return jnp.dot(a, b, preferred_element_type=jnp.float32)

    # in_proj: X^T = W_in^T x^T + b^T   (1/sqrt(N) folded into w_in)
    X = dot(w_in_ref[...], xT_ref[...].astype(bf16)) + b_in_ref[...]   # [H, N]

    # Readout accumulation replaces concat(hidden) @ mlp1: slab 0 now.
    Yacc = dot(wm1_ref[0], X.astype(bf16))                              # [H, N]

    for l in range(n_layers):                                           # SCTConv
        h = X
        h_b = h.astype(bf16)

        # 6 independent diffusion matmuls against the same h_b (precomputed
        # operator powers/wavelets -> no serial matmul chains).
        d = [dot(h_b, ops_ref[k]) for k in range(6)]                     # [H, N]
        chans = [_leaky(d[0]), _leaky(d[1]), _leaky(d[2]),
                 _abs_pow(d[3], moment), _abs_pow(d[4], moment),
                 _abs_pow(d[5], moment)]

        # attention: e_k = relu([h, h_k]) @ a = relu(h)·a1 + relu(h_k)·a2
        aa = a_ref[l]                                                    # [H, 2]
        a1 = aa[:, 0:1]                                                  # [H, 1]
        a2 = aa[:, 1:2]
        e_h = jnp.sum(_relu(h) * a1, axis=0, keepdims=True)              # [1, N]
        e = [e_h + jnp.sum(_relu(c) * a2, axis=0, keepdims=True) for c in chans]
        m = e[0]
        for ek in e[1:]:
            m = jnp.maximum(m, ek)
        ex = [jnp.exp(ek - m) for ek in e]
        denom = ex[0]
        for xk in ex[1:]:
            denom = denom + xk
        inv = pl.reciprocal(denom, approx=True)                          # [1, N]

        # h_prime = mean_k(att_k * h_k)
        h_prime = chans[0] * (ex[0] * inv)
        for k in range(1, 6):
            h_prime = h_prime + chans[k] * (ex[k] * inv)
        h_prime = h_prime * (1.0 / 6.0)

        # linear1 -> leaky -> linear2 -> leaky (1/sqrt(N) folded into w2/b2)
        X = _leaky(dot(w1_ref[l], h_prime.astype(bf16)) + b1_ref[l])
        X = _leaky(dot(w2_ref[l], X.astype(bf16)) + b2_ref[l])

        # Fold this hidden state into the readout immediately (small live set).
        Yacc = Yacc + dot(wm1_ref[l + 1], X.astype(bf16))

    # mlp1 bias + leaky -> mlp2 -> global min-max normalization
    Y = _leaky(Yacc + bm1_ref[...])
    Y = dot(wm2_ref[...], Y.astype(bf16)) + bm2_ref[...]                 # [O, N]

    mx = jnp.max(Y, keepdims=True)                                       # [1, 1]
    mn = jnp.min(Y, keepdims=True)
    out_ref[...] = (Y - mn) * pl.reciprocal(mx + 1e-6 - mn, approx=True)


def gnn_forward(params, X, adj, *, n_layers, moment=1):
    assert isinstance(moment, int) and moment >= 1, "moment must be a static int"
    bf16 = jnp.bfloat16
    N, F = X.shape
    H = params["w_in"].shape[1]
    O = params["wm2"].shape[1]
    L = n_layers
    inv_scale = 1.0 / math.sqrt(N)

    # Diffusion operator powers, transposed + bf16, built once outside.
    ops_t = build_operators(adj)                                        # [6,N,N]

    # Transposed (feature-major) weights: in-kernel y^T = W^T x^T + b^T.
    # All matmul weights pre-cast to bf16; biases stay f32.
    xT = jnp.transpose(X).astype(jnp.float32)                           # [F, N]
    w_inT = jnp.transpose(params["w_in"] * inv_scale).astype(bf16)      # [H, F]
    b_inT = jnp.transpose(params["b_in"])                               # [H, 1]
    aT = jnp.transpose(params["a"], (0, 2, 1))                          # [L, H, 2]
    w1T = jnp.transpose(params["w1"], (0, 2, 1)).astype(bf16)           # [L, H, H]
    b1T = jnp.transpose(params["b1"], (0, 2, 1))                        # [L, H, 1]
    w2T = jnp.transpose(params["w2"] * inv_scale, (0, 2, 1)).astype(bf16)
    b2T = jnp.transpose(params["b2"] * inv_scale, (0, 2, 1))
    wm1T = jnp.transpose(params["wm1"].reshape(1 + L, H, H),
                         (0, 2, 1)).astype(bf16)                        # [1+L,H,H]
    bm1T = jnp.transpose(params["bm1"])                                 # [H, 1]
    wm2T = jnp.transpose(params["wm2"]).astype(bf16)                    # [O, H]
    bm2T = jnp.transpose(params["bm2"])                                 # [O, 1]

    args = (xT, ops_t, w_inT, b_inT, aT, w1T, b1T, w2T, b2T,
            wm1T, bm1T, wm2T, bm2T)

    in_bytes = sum(int(a.size) * jnp.dtype(a.dtype).itemsize for a in args)
    out_bytes = O * N * 4
    live_act_bytes = 14 * H * N * 4        # h, 6 chans, h_prime, X, Yacc, ...
    need = in_bytes + out_bytes + live_act_bytes

    flops = 2 * (F * H * N
                 + L * (6 * N * N * H + 2 * H * H * N + 7 * H * N)
                 + (1 + L) * H * H * N
                 + H * O * N)
    cost = pl.CostEstimate(flops=int(flops),
                           transcendentals=int(6 * L * N + L * N + 1),
                           bytes_accessed=int(in_bytes + out_bytes))

    kernel = functools.partial(_gnn_kernel, n_layers=n_layers, moment=moment)
    out_t = pl.pallas_call(
        kernel,
        out_shape=jax.ShapeDtypeStruct((O, N), jnp.float32),
        in_specs=[pl.BlockSpec(memory_space=pltpu.MemorySpace.VMEM)
                  for _ in args],
        out_specs=pl.BlockSpec(memory_space=pltpu.MemorySpace.VMEM),
        compiler_params=pltpu.CompilerParams(
            vmem_limit_bytes=_vmem_limit_bytes(need)),
        cost_estimate=cost,
    )(*args)
    return jnp.transpose(out_t)                                         # [N, O]


# ----------------------------------------------------------------------------
# Pure-JAX reference (natural [N, H] orientation, same bf16 rounding points)
# ----------------------------------------------------------------------------
def gnn_reference(params, X, adj, *, n_layers, moment=1):
    bf16 = jnp.bfloat16
    N = X.shape[0]
    inv_scale = 1.0 / math.sqrt(N)
    ops = jnp.transpose(build_operators(adj), (0, 2, 1))   # OP_k, bf16 [6,N,N]

    def dot(a, b):
        return jnp.dot(a.astype(bf16), b.astype(bf16),
                       preferred_element_type=jnp.float32)

    w_in = (params["w_in"] * inv_scale).astype(bf16)
    w1 = params["w1"].astype(bf16)
    w2 = (params["w2"] * inv_scale).astype(bf16)
    b2 = params["b2"] * inv_scale
    wm1 = params["wm1"].astype(bf16)
    wm2 = params["wm2"].astype(bf16)

    X = dot(X, w_in) + params["b_in"]
    hidden = [X]
    for l in range(n_layers):
        h = X
        d = [dot(ops[k], h) for k in range(6)]
        chans = [_leaky(d[0]), _leaky(d[1]), _leaky(d[2]),
                 _abs_pow(d[3], moment), _abs_pow(d[4], moment),
                 _abs_pow(d[5], moment)]
        a1 = params["a"][l, 0:1, :]
        a2 = params["a"][l, 1:2, :]
        e_h = jnp.sum(_relu(h) * a1, axis=1, keepdims=True)
        e = jnp.concatenate(
            [e_h + jnp.sum(_relu(c) * a2, axis=1, keepdims=True) for c in chans],
            axis=1)
        att = jax.nn.softmax(e, axis=1)
        h_prime = sum(chans[k] * att[:, k:k + 1] for k in range(6)) / 6.0
        X = _leaky(dot(h_prime, w1[l]) + params["b1"][l])
        X = _leaky(dot(X, w2[l]) + b2[l])
        hidden.append(X)
    Y = _leaky(dot(jnp.concatenate(hidden, axis=1), wm1) + params["bm1"])
    Y = dot(Y, wm2) + params["bm2"]
    return (Y - Y.min()) / (Y.max() + 1e-6 - Y.min())


# ----------------------------------------------------------------------------
# Deterministic parameter initialization (shapes from GNN.__init__)
# ----------------------------------------------------------------------------
def init_params(key, input_dim, hidden_dim, output_dim, n_layers):
    def linear(k, fan_in, fan_out):
        bound = 1.0 / jnp.sqrt(jnp.asarray(fan_in, jnp.float32))
        kw, kb = jax.random.split(k)
        w = jax.random.uniform(kw, (fan_in, fan_out), jnp.float32, -bound, bound)
        b = jax.random.uniform(kb, (1, fan_out), jnp.float32, -bound, bound)
        return w, b

    ks = jax.random.split(key, 4 + 3 * n_layers)
    w_in, b_in = linear(ks[0], input_dim, hidden_dim)
    wm1, bm1 = linear(ks[1], hidden_dim * (1 + n_layers), hidden_dim)
    wm2, bm2 = linear(ks[2], hidden_dim, output_dim)

    a_list, w1_list, b1_list, w2_list, b2_list = [], [], [], [], []
    for l in range(n_layers):
        # NOTE: reference init for `a` is zeros; use small random values here so
        # the attention branch is non-degenerate (deterministic via PRNGKey).
        a_list.append(0.1 * jax.random.normal(ks[3 + 3 * l],
                                              (2, hidden_dim), jnp.float32))
        w1, b1 = linear(ks[4 + 3 * l], hidden_dim, hidden_dim)
        w2, b2 = linear(ks[5 + 3 * l], hidden_dim, hidden_dim)
        w1_list.append(w1); b1_list.append(b1)
        w2_list.append(w2); b2_list.append(b2)

    return {
        "w_in": w_in, "b_in": b_in,
        "a": jnp.stack(a_list),                               # [L, 2, H]
        "w1": jnp.stack(w1_list), "b1": jnp.stack(b1_list),   # [L,H,H], [L,1,H]
        "w2": jnp.stack(w2_list), "b2": jnp.stack(b2_list),
        "wm1": wm1, "bm1": bm1, "wm2": wm2, "bm2": bm2,
    }


if __name__ == "__main__":
    key = jax.random.PRNGKey(0)
    N, input_dim, hidden_dim, output_dim, n_layers = 16, 8, 32, 4, 2

    kx, ka, kp = jax.random.split(key, 3)
    X = jax.random.normal(kx, (N, input_dim), jnp.float32)

    # symmetric 0/1 adjacency, no self loops, every node has >=2 neighbors
    up = (jax.random.uniform(ka, (N, N)) < 0.3).astype(jnp.float32)
    adj = jnp.triu(up, 1)
    adj = adj + adj.T
    ring = jnp.roll(jnp.eye(N, dtype=jnp.float32), 1, axis=1)
    adj = jnp.clip(adj + ring + ring.T, 0.0, 1.0)

    params = init_params(kp, input_dim, hidden_dim, output_dim, n_layers)

    out = gnn_forward(params, X, adj, n_layers=n_layers, moment=1)
    out = jax.block_until_ready(out)
    assert out.shape == (N, output_dim), out.shape

    ref = gnn_reference(params, X, adj, n_layers=n_layers, moment=1)
    assert jnp.allclose(out, ref, atol=5e-3, rtol=5e-3), \
        float(jnp.max(jnp.abs(out - ref)))

    print("KERNEL_OK")
</pallas_src>

<mosaic_0001>
module attributes {stable_mosaic.version = 11 : i64} {
  func.func @_gnn_kernel(%arg0: memref<8x16xf32, #tpu.memory_space<vmem>>, %arg1: memref<6x16x16xbf16, #tpu.memory_space<vmem>>, %arg2: memref<32x8xbf16, #tpu.memory_space<vmem>>, %arg3: memref<32x1xf32, #tpu.memory_space<vmem>>, %arg4: memref<2x32x2xf32, #tpu.memory_space<vmem>>, %arg5: memref<2x32x32xbf16, #tpu.memory_space<vmem>>, %arg6: memref<2x32x1xf32, #tpu.memory_space<vmem>>, %arg7: memref<2x32x32xbf16, #tpu.memory_space<vmem>>, %arg8: memref<2x32x1xf32, #tpu.memory_space<vmem>>, %arg9: memref<3x32x32xbf16, #tpu.memory_space<vmem>>, %arg10: memref<32x1xf32, #tpu.memory_space<vmem>>, %arg11: memref<4x32xbf16, #tpu.memory_space<vmem>>, %arg12: memref<4x1xf32, #tpu.memory_space<vmem>>, %arg13: memref<4x16xf32, #tpu.memory_space<vmem>>) attributes {dimension_semantics = [], scalar_prefetch = 0 : i64, scratch_operands = 0 : i64, tpu.core_type = #tpu.core_type<tc>} {
    %c0 = arith.constant 0 : index
    %c0_0 = arith.constant 0 : index
    %0 = vector.load %arg2[%c0, %c0_0] : memref<32x8xbf16, #tpu.memory_space<vmem>>, vector<32x8xbf16>
    %c0_1 = arith.constant 0 : index
    %c0_2 = arith.constant 0 : index
    %1 = vector.load %arg0[%c0_1, %c0_2] : memref<8x16xf32, #tpu.memory_space<vmem>>, vector<8x16xf32>
    %2 = arith.truncf %1 : vector<8x16xf32> to vector<8x16xbf16>
    %cst = arith.constant dense<0.000000e+00> : vector<32x16xf32>
    %3 = tpu.matmul %0, %2, %cst {dimension_numbers = #tpu.dot_dimension_numbers<[1], [0], [0], [1], [0, 0, 1, 1], [], []>} : vector<32x8xbf16>, vector<8x16xbf16>, vector<32x16xf32> -> vector<32x16xf32>
    %c0_3 = arith.constant 0 : index
    %c0_4 = arith.constant 0 : index
    %4 = vector.load %arg3[%c0_3, %c0_4] : memref<32x1xf32, #tpu.memory_space<vmem>>, vector<32x1xf32>
    %5 = vector.broadcast %4 : vector<32x1xf32> to vector<32x16xf32>
    %6 = arith.addf %3, %5 : vector<32x16xf32>
    %c0_5 = arith.constant 0 : index
    %c0_6 = arith.constant 0 : index
    %c0_7 = arith.constant 0 : index
    %7 = vector.load %arg9[%c0_5, %c0_6, %c0_7] : memref<3x32x32xbf16, #tpu.memory_space<vmem>>, vector<1x32x32xbf16>
    %8 = vector.shape_cast %7 : vector<1x32x32xbf16> to vector<32x32xbf16>
    %9 = arith.truncf %6 : vector<32x16xf32> to vector<32x16xbf16>
    %cst_8 = arith.constant dense<0.000000e+00> : vector<32x16xf32>
    %10 = tpu.matmul %8, %9, %cst_8 {dimension_numbers = #tpu.dot_dimension_numbers<[1], [0], [0], [1], [0, 0, 1, 1], [], []>} : vector<32x32xbf16>, vector<32x16xbf16>, vector<32x16xf32> -> vector<32x16xf32>
    %11 = arith.truncf %6 : vector<32x16xf32> to vector<32x16xbf16>
    %c0_9 = arith.constant 0 : index
    %c0_10 = arith.constant 0 : index
    %c0_11 = arith.constant 0 : index
    %12 = vector.load %arg1[%c0_9, %c0_10, %c0_11] : memref<6x16x16xbf16, #tpu.memory_space<vmem>>, vector<1x16x16xbf16>
    %13 = vector.shape_cast %12 : vector<1x16x16xbf16> to vector<16x16xbf16>
    %cst_12 = arith.constant dense<0.000000e+00> : vector<32x16xf32>
    %14 = tpu.matmul %11, %13, %cst_12 {dimension_numbers = #tpu.dot_dimension_numbers<[1], [0], [0], [1], [0, 0, 1, 1], [], []>} : vector<32x16xbf16>, vector<16x16xbf16>, vector<32x16xf32> -> vector<32x16xf32>
    %c1 = arith.constant 1 : index
    %c0_13 = arith.constant 0 : index
    %c0_14 = arith.constant 0 : index
    %15 = vector.load %arg1[%c1, %c0_13, %c0_14] : memref<6x16x16xbf16, #tpu.memory_space<vmem>>, vector<1x16x16xbf16>
    %16 = vector.shape_cast %15 : vector<1x16x16xbf16> to vector<16x16xbf16>
    %cst_15 = arith.constant dense<0.000000e+00> : vector<32x16xf32>
    %17 = tpu.matmul %11, %16, %cst_15 {dimension_numbers = #tpu.dot_dimension_numbers<[1], [0], [0], [1], [0, 0, 1, 1], [], []>} : vector<32x16xbf16>, vector<16x16xbf16>, vector<32x16xf32> -> vector<32x16xf32>
    %c2 = arith.constant 2 : index
    %c0_16 = arith.constant 0 : index
    %c0_17 = arith.constant 0 : index
    %18 = vector.load %arg1[%c2, %c0_16, %c0_17] : memref<6x16x16xbf16, #tpu.memory_space<vmem>>, vector<1x16x16xbf16>
    %19 = vector.shape_cast %18 : vector<1x16x16xbf16> to vector<16x16xbf16>
    %cst_18 = arith.constant dense<0.000000e+00> : vector<32x16xf32>
    %20 = tpu.matmul %11, %19, %cst_18 {dimension_numbers = #tpu.dot_dimension_numbers<[1], [0], [0], [1], [0, 0, 1, 1], [], []>} : vector<32x16xbf16>, vector<16x16xbf16>, vector<32x16xf32> -> vector<32x16xf32>
    %c3 = arith.constant 3 : index
    %c0_19 = arith.constant 0 : index
    %c0_20 = arith.constant 0 : index
    %21 = vector.load %arg1[%c3, %c0_19, %c0_20] : memref<6x16x16xbf16, #tpu.memory_space<vmem>>, vector<1x16x16xbf16>
    %22 = vector.shape_cast %21 : vector<1x16x16xbf16> to vector<16x16xbf16>
    %cst_21 = arith.constant dense<0.000000e+00> : vector<32x16xf32>
    %23 = tpu.matmul %11, %22, %cst_21 {dimension_numbers = #tpu.dot_dimension_numbers<[1], [0], [0], [1], [0, 0, 1, 1], [], []>} : vector<32x16xbf16>, vector<16x16xbf16>, vector<32x16xf32> -> vector<32x16xf32>
    %c4 = arith.constant 4 : index
    %c0_22 = arith.constant 0 : index
    %c0_23 = arith.constant 0 : index
    %24 = vector.load %arg1[%c4, %c0_22, %c0_23] : memref<6x16x16xbf16, #tpu.memory_space<vmem>>, vector<1x16x16xbf16>
    %25 = vector.shape_cast %24 : vector<1x16x16xbf16> to vector<16x16xbf16>
    %cst_24 = arith.constant dense<0.000000e+00> : vector<32x16xf32>
    %26 = tpu.matmul %11, %25, %cst_24 {dimension_numbers = #tpu.dot_dimension_numbers<[1], [0], [0], [1], [0, 0, 1, 1], [], []>} : vector<32x16xbf16>, vector<16x16xbf16>, vector<32x16xf32> -> vector<32x16xf32>
    %c5 = arith.constant 5 : index
    %c0_25 = arith.constant 0 : index
    %c0_26 = arith.constant 0 : index
    %27 = vector.load %arg1[%c5, %c0_25, %c0_26] : memref<6x16x16xbf16, #tpu.memory_space<vmem>>, vector<1x16x16xbf16>
    %28 = vector.shape_cast %27 : vector<1x16x16xbf16> to vector<16x16xbf16>
    %cst_27 = arith.constant dense<0.000000e+00> : vector<32x16xf32>
    %29 = tpu.matmul %11, %28, %cst_27 {dimension_numbers = #tpu.dot_dimension_numbers<[1], [0], [0], [1], [0, 0, 1, 1], [], []>} : vector<32x16xbf16>, vector<16x16xbf16>, vector<32x16xf32> -> vector<32x16xf32>
    %cst_28 = arith.constant 0.000000e+00 : f32
    %30 = vector.broadcast %cst_28 : f32 to vector<32x16xf32>
    %31 = arith.cmpf oge, %14, %30 : vector<32x16xf32>
    %cst_29 = arith.constant 0.00999999977 : f32
    %32 = vector.broadcast %cst_29 : f32 to vector<32x16xf32>
    %33 = arith.mulf %32, %14 : vector<32x16xf32>
    %34 = arith.select %31, %14, %33 : vector<32x16xi1>, vector<32x16xf32>
    %cst_30 = arith.constant 0.000000e+00 : f32
    %35 = vector.broadcast %cst_30 : f32 to vector<32x16xf32>
    %36 = arith.cmpf oge, %17, %35 : vector<32x16xf32>
    %cst_31 = arith.constant 0.00999999977 : f32
    %37 = vector.broadcast %cst_31 : f32 to vector<32x16xf32>
    %38 = arith.mulf %37, %17 : vector<32x16xf32>
    %39 = arith.select %36, %17, %38 : vector<32x16xi1>, vector<32x16xf32>
    %cst_32 = arith.constant 0.000000e+00 : f32
    %40 = vector.broadcast %cst_32 : f32 to vector<32x16xf32>
    %41 = arith.cmpf oge, %20, %40 : vector<32x16xf32>
    %cst_33 = arith.constant 0.00999999977 : f32
    %42 = vector.broadcast %cst_33 : f32 to vector<32x16xf32>
    %43 = arith.mulf %42, %20 : vector<32x16xf32>
    %44 = arith.select %41, %20, %43 : vector<32x16xi1>, vector<32x16xf32>
    %45 = math.absf %23 : vector<32x16xf32>
    %46 = math.absf %26 : vector<32x16xf32>
    %47 = math.absf %29 : vector<32x16xf32>
    %c0_34 = arith.constant 0 : index
    %c0_35 = arith.constant 0 : index
    %c0_36 = arith.constant 0 : index
    %48 = vector.load %arg4[%c0_34, %c0_35, %c0_36] : memref<2x32x2xf32, #tpu.memory_space<vmem>>, vector<1x32x2xf32>
    %49 = vector.shape_cast %48 : vector<1x32x2xf32> to vector<32x2xf32>
    %50 = vector.extract_strided_slice %49 {offsets = [0, 0], sizes = [32, 1], strides = [1, 1]} : vector<32x2xf32> to vector<32x1xf32>
    %51 = vector.extract_strided_slice %49 {offsets = [0, 1], sizes = [32, 1], strides = [1, 1]} : vector<32x2xf32> to vector<32x1xf32>
    %cst_37 = arith.constant 0.000000e+00 : f32
    %52 = vector.broadcast %cst_37 : f32 to vector<32x16xf32>
    %53 = arith.maximumf %6, %52 : vector<32x16xf32>
    %54 = vector.broadcast %50 : vector<32x1xf32> to vector<32x16xf32>
    %55 = arith.mulf %53, %54 : vector<32x16xf32>
    %cst_38 = arith.constant dense<0.000000e+00> : vector<16xf32>
    %56 = vector.multi_reduction <add>, %55, %cst_38 [0] : vector<32x16xf32> to vector<16xf32>
    %57 = vector.shape_cast %56 : vector<16xf32> to vector<1x16xf32>
    %cst_39 = arith.constant 0.000000e+00 : f32
    %58 = vector.broadcast %cst_39 : f32 to vector<32x16xf32>
    %59 = arith.maximumf %34, %58 : vector<32x16xf32>
    %60 = vector.broadcast %51 : vector<32x1xf32> to vector<32x16xf32>
    %61 = arith.mulf %59, %60 : vector<32x16xf32>
    %cst_40 = arith.constant dense<0.000000e+00> : vector<16xf32>
    %62 = vector.multi_reduction <add>, %61, %cst_40 [0] : vector<32x16xf32> to vector<16xf32>
    %63 = vector.shape_cast %62 : vector<16xf32> to vector<1x16xf32>
    %64 = arith.addf %57, %63 : vector<1x16xf32>
    %cst_41 = arith.constant 0.000000e+00 : f32
    %65 = vector.broadcast %cst_41 : f32 to vector<32x16xf32>
    %66 = arith.maximumf %39, %65 : vector<32x16xf32>
    %67 = vector.broadcast %51 : vector<32x1xf32> to vector<32x16xf32>
    %68 = arith.mulf %66, %67 : vector<32x16xf32>
    %cst_42 = arith.constant dense<0.000000e+00> : vector<16xf32>
    %69 = vector.multi_reduction <add>, %68, %cst_42 [0] : vector<32x16xf32> to vector<16xf32>
    %70 = vector.shape_cast %69 : vector<16xf32> to vector<1x16xf32>
    %71 = arith.addf %57, %70 : vector<1x16xf32>
    %cst_43 = arith.constant 0.000000e+00 : f32
    %72 = vector.broadcast %cst_43 : f32 to vector<32x16xf32>
    %73 = arith.maximumf %44, %72 : vector<32x16xf32>
    %74 = vector.broadcast %51 : vector<32x1xf32> to vector<32x16xf32>
    %75 = arith.mulf %73, %74 : vector<32x16xf32>
    %cst_44 = arith.constant dense<0.000000e+00> : vector<16xf32>
    %76 = vector.multi_reduction <add>, %75, %cst_44 [0] : vector<32x16xf32> to vector<16xf32>
    %77 = vector.shape_cast %76 : vector<16xf32> to vector<1x16xf32>
    %78 = arith.addf %57, %77 : vector<1x16xf32>
    %cst_45 = arith.constant 0.000000e+00 : f32
    %79 = vector.broadcast %cst_45 : f32 to vector<32x16xf32>
    %80 = arith.maximumf %45, %79 : vector<32x16xf32>
    %81 = vector.broadcast %51 : vector<32x1xf32> to vector<32x16xf32>
    %82 = arith.mulf %80, %81 : vector<32x16xf32>
    %cst_46 = arith.constant dense<0.000000e+00> : vector<16xf32>
    %83 = vector.multi_reduction <add>, %82, %cst_46 [0] : vector<32x16xf32> to vector<16xf32>
    %84 = vector.shape_cast %83 : vector<16xf32> to vector<1x16xf32>
    %85 = arith.addf %57, %84 : vector<1x16xf32>
    %cst_47 = arith.constant 0.000000e+00 : f32
    %86 = vector.broadcast %cst_47 : f32 to vector<32x16xf32>
    %87 = arith.maximumf %46, %86 : vector<32x16xf32>
    %88 = vector.broadcast %51 : vector<32x1xf32> to vector<32x16xf32>
    %89 = arith.mulf %87, %88 : vector<32x16xf32>
    %cst_48 = arith.constant dense<0.000000e+00> : vector<16xf32>
    %90 = vector.multi_reduction <add>, %89, %cst_48 [0] : vector<32x16xf32> to vector<16xf32>
    %91 = vector.shape_cast %90 : vector<16xf32> to vector<1x16xf32>
    %92 = arith.addf %57, %91 : vector<1x16xf32>
    %cst_49 = arith.constant 0.000000e+00 : f32
    %93 = vector.broadcast %cst_49 : f32 to vector<32x16xf32>
    %94 = arith.maximumf %47, %93 : vector<32x16xf32>
    %95 = vector.broadcast %51 : vector<32x1xf32> to vector<32x16xf32>
    %96 = arith.mulf %94, %95 : vector<32x16xf32>
    %cst_50 = arith.constant dense<0.000000e+00> : vector<16xf32>
    %97 = vector.multi_reduction <add>, %96, %cst_50 [0] : vector<32x16xf32> to vector<16xf32>
    %98 = vector.shape_cast %97 : vector<16xf32> to vector<1x16xf32>
    %99 = arith.addf %57, %98 : vector<1x16xf32>
    %100 = arith.maximumf %64, %71 : vector<1x16xf32>
    %101 = arith.maximumf %100, %78 : vector<1x16xf32>
    %102 = arith.maximumf %101, %85 : vector<1x16xf32>
    %103 = arith.maximumf %102, %92 : vector<1x16xf32>
    %104 = arith.maximumf %103, %99 : vector<1x16xf32>
    %105 = arith.subf %64, %104 : vector<1x16xf32>
    %106 = math.exp %105 : vector<1x16xf32>
    %107 = arith.subf %71, %104 : vector<1x16xf32>
    %108 = math.exp %107 : vector<1x16xf32>
    %109 = arith.subf %78, %104 : vector<1x16xf32>
    %110 = math.exp %109 : vector<1x16xf32>
    %111 = arith.subf %85, %104 : vector<1x16xf32>
    %112 = math.exp %111 : vector<1x16xf32>
    %113 = arith.subf %92, %104 : vector<1x16xf32>
    %114 = math.exp %113 : vector<1x16xf32>
    %115 = arith.subf %99, %104 : vector<1x16xf32>
    %116 = math.exp %115 : vector<1x16xf32>
    %117 = arith.addf %106, %108 : vector<1x16xf32>
    %118 = arith.addf %117, %110 : vector<1x16xf32>
    %119 = arith.addf %118, %112 : vector<1x16xf32>
    %120 = arith.addf %119, %114 : vector<1x16xf32>
    %121 = arith.addf %120, %116 : vector<1x16xf32>
    %122 = tpu.reciprocal %121 {approx = true} : vector<1x16xf32> -> vector<1x16xf32>
    %123 = arith.mulf %106, %122 : vector<1x16xf32>
    %124 = vector.broadcast %123 : vector<1x16xf32> to vector<32x16xf32>
    %125 = arith.mulf %34, %124 : vector<32x16xf32>
    %126 = arith.mulf %108, %122 : vector<1x16xf32>
    %127 = vector.broadcast %126 : vector<1x16xf32> to vector<32x16xf32>
    %128 = arith.mulf %39, %127 : vector<32x16xf32>
    %129 = arith.addf %125, %128 : vector<32x16xf32>
    %130 = arith.mulf %110, %122 : vector<1x16xf32>
    %131 = vector.broadcast %130 : vector<1x16xf32> to vector<32x16xf32>
    %132 = arith.mulf %44, %131 : vector<32x16xf32>
    %133 = arith.addf %129, %132 : vector<32x16xf32>
    %134 = arith.mulf %112, %122 : vector<1x16xf32>
    %135 = vector.broadcast %134 : vector<1x16xf32> to vector<32x16xf32>
    %136 = arith.mulf %45, %135 : vector<32x16xf32>
    %137 = arith.addf %133, %136 : vector<32x16xf32>
    %138 = arith.mulf %114, %122 : vector<1x16xf32>
    %139 = vector.broadcast %138 : vector<1x16xf32> to vector<32x16xf32>
    %140 = arith.mulf %46, %139 : vector<32x16xf32>
    %141 = arith.addf %137, %140 : vector<32x16xf32>
    %142 = arith.mulf %116, %122 : vector<1x16xf32>
    %143 = vector.broadcast %142 : vector<1x16xf32> to vector<32x16xf32>
    %144 = arith.mulf %47, %143 : vector<32x16xf32>
    %145 = arith.addf %141, %144 : vector<32x16xf32>
    %cst_51 = arith.constant 0.166666672 : f32
    %146 = vector.broadcast %cst_51 : f32 to vector<32x16xf32>
    %147 = arith.mulf %145, %146 : vector<32x16xf32>
    %c0_52 = arith.constant 0 : index
    %c0_53 = arith.constant 0 : index
    %c0_54 = arith.constant 0 : index
    %148 = vector.load %arg5[%c0_52, %c0_53, %c0_54] : memref<2x32x32xbf16, #tpu.memory_space<vmem>>, vector<1x32x32xbf16>
    %149 = vector.shape_cast %148 : vector<1x32x32xbf16> to vector<32x32xbf16>
    %150 = arith.truncf %147 : vector<32x16xf32> to vector<32x16xbf16>
    %cst_55 = arith.constant dense<0.000000e+00> : vector<32x16xf32>
    %151 = tpu.matmul %149, %150, %cst_55 {dimension_numbers = #tpu.dot_dimension_numbers<[1], [0], [0], [1], [0, 0, 1, 1], [], []>} : vector<32x32xbf16>, vector<32x16xbf16>, vector<32x16xf32> -> vector<32x16xf32>
    %c0_56 = arith.constant 0 : index
    %c0_57 = arith.constant 0 : index
    %c0_58 = arith.constant 0 : index
    %152 = vector.load %arg6[%c0_56, %c0_57, %c0_58] : memref<2x32x1xf32, #tpu.memory_space<vmem>>, vector<1x32x1xf32>
    %153 = vector.shape_cast %152 : vector<1x32x1xf32> to vector<32x1xf32>
    %154 = vector.broadcast %153 : vector<32x1xf32> to vector<32x16xf32>
    %155 = arith.addf %151, %154 : vector<32x16xf32>
    %cst_59 = arith.constant 0.000000e+00 : f32
    %156 = vector.broadcast %cst_59 : f32 to vector<32x16xf32>
    %157 = arith.cmpf oge, %155, %156 : vector<32x16xf32>
    %cst_60 = arith.constant 0.00999999977 : f32
    %158 = vector.broadcast %cst_60 : f32 to vector<32x16xf32>
    %159 = arith.mulf %158, %155 : vector<32x16xf32>
    %160 = arith.select %157, %155, %159 : vector<32x16xi1>, vector<32x16xf32>
    %c0_61 = arith.constant 0 : index
    %c0_62 = arith.constant 0 : index
    %c0_63 = arith.constant 0 : index
    %161 = vector.load %arg7[%c0_61, %c0_62, %c0_63] : memref<2x32x32xbf16, #tpu.memory_space<vmem>>, vector<1x32x32xbf16>
    %162 = vector.shape_cast %161 : vector<1x32x32xbf16> to vector<32x32xbf16>
    %163 = arith.truncf %160 : vector<32x16xf32> to vector<32x16xbf16>
    %cst_64 = arith.constant dense<0.000000e+00> : vector<32x16xf32>
    %164 = tpu.matmul %162, %163, %cst_64 {dimension_numbers = #tpu.dot_dimension_numbers<[1], [0], [0], [1], [0, 0, 1, 1], [], []>} : vector<32x32xbf16>, vector<32x16xbf16>, vector<32x16xf32> -> vector<32x16xf32>
    %c0_65 = arith.constant 0 : index
    %c0_66 = arith.constant 0 : index
    %c0_67 = arith.constant 0 : index
    %165 = vector.load %arg8[%c0_65, %c0_66, %c0_67] : memref<2x32x1xf32, #tpu.memory_space<vmem>>, vector<1x32x1xf32>
    %166 = vector.shape_cast %165 : vector<1x32x1xf32> to vector<32x1xf32>
    %167 = vector.broadcast %166 : vector<32x1xf32> to vector<32x16xf32>
    %168 = arith.addf %164, %167 : vector<32x16xf32>
    %cst_68 = arith.constant 0.000000e+00 : f32
    %169 = vector.broadcast %cst_68 : f32 to vector<32x16xf32>
    %170 = arith.cmpf oge, %168, %169 : vector<32x16xf32>
    %cst_69 = arith.constant 0.00999999977 : f32
    %171 = vector.broadcast %cst_69 : f32 to vector<32x16xf32>
    %172 = arith.mulf %171, %168 : vector<32x16xf32>
    %173 = arith.select %170, %168, %172 : vector<32x16xi1>, vector<32x16xf32>
    %c1_70 = arith.constant 1 : index
    %c0_71 = arith.constant 0 : index
    %c0_72 = arith.constant 0 : index
    %174 = vector.load %arg9[%c1_70, %c0_71, %c0_72] : memref<3x32x32xbf16, #tpu.memory_space<vmem>>, vector<1x32x32xbf16>
    %175 = vector.shape_cast %174 : vector<1x32x32xbf16> to vector<32x32xbf16>
    %176 = arith.truncf %173 : vector<32x16xf32> to vector<32x16xbf16>
    %cst_73 = arith.constant dense<0.000000e+00> : vector<32x16xf32>
    %177 = tpu.matmul %175, %176, %cst_73 {dimension_numbers = #tpu.dot_dimension_numbers<[1], [0], [0], [1], [0, 0, 1, 1], [], []>} : vector<32x32xbf16>, vector<32x16xbf16>, vector<32x16xf32> -> vector<32x16xf32>
    %178 = arith.addf %10, %177 : vector<32x16xf32>
    %179 = arith.truncf %173 : vector<32x16xf32> to vector<32x16xbf16>
    %c0_74 = arith.constant 0 : index
    %c0_75 = arith.constant 0 : index
    %c0_76 = arith.constant 0 : index
    %180 = vector.load %arg1[%c0_74, %c0_75, %c0_76] : memref<6x16x16xbf16, #tpu.memory_space<vmem>>, vector<1x16x16xbf16>
    %181 = vector.shape_cast %180 : vector<1x16x16xbf16> to vector<16x16xbf16>
    %cst_77 = arith.constant dense<0.000000e+00> : vector<32x16xf32>
    %182 = tpu.matmul %179, %181, %cst_77 {dimension_numbers = #tpu.dot_dimension_numbers<[1], [0], [0], [1], [0, 0, 1, 1], [], []>} : vector<32x16xbf16>, vector<16x16xbf16>, vector<32x16xf32> -> vector<32x16xf32>
    %c1_78 = arith.constant 1 : index
    %c0_79 = arith.constant 0 : index
    %c0_80 = arith.constant 0 : index
    %183 = vector.load %arg1[%c1_78, %c0_79, %c0_80] : memref<6x16x16xbf16, #tpu.memory_space<vmem>>, vector<1x16x16xbf16>
    %184 = vector.shape_cast %183 : vector<1x16x16xbf16> to vector<16x16xbf16>
    %cst_81 = arith.constant dense<0.000000e+00> : vector<32x16xf32>
    %185 = tpu.matmul %179, %184, %cst_81 {dimension_numbers = #tpu.dot_dimension_numbers<[1], [0], [0], [1], [0, 0, 1, 1], [], []>} : vector<32x16xbf16>, vector<16x16xbf16>, vector<32x16xf32> -> vector<32x16xf32>
    %c2_82 = arith.constant 2 : index
    %c0_83 = arith.constant 0 : index
    %c0_84 = arith.constant 0 : index
    %186 = vector.load %arg1[%c2_82, %c0_83, %c0_84] : memref<6x16x16xbf16, #tpu.memory_space<vmem>>, vector<1x16x16xbf16>
    %187 = vector.shape_cast %186 : vector<1x16x16xbf16> to vector<16x16xbf16>
    %cst_85 = arith.constant dense<0.000000e+00> : vector<32x16xf32>
    %188 = tpu.matmul %179, %187, %cst_85 {dimension_numbers = #tpu.dot_dimension_numbers<[1], [0], [0], [1], [0, 0, 1, 1], [], []>} : vector<32x16xbf16>, vector<16x16xbf16>, vector<32x16xf32> -> vector<32x16xf32>
    %c3_86 = arith.constant 3 : index
    %c0_87 = arith.constant 0 : index
    %c0_88 = arith.constant 0 : index
    %189 = vector.load %arg1[%c3_86, %c0_87, %c0_88] : memref<6x16x16xbf16, #tpu.memory_space<vmem>>, vector<1x16x16xbf16>
    %190 = vector.shape_cast %189 : vector<1x16x16xbf16> to vector<16x16xbf16>
    %cst_89 = arith.constant dense<0.000000e+00> : vector<32x16xf32>
    %191 = tpu.matmul %179, %190, %cst_89 {dimension_numbers = #tpu.dot_dimension_numbers<[1], [0], [0], [1], [0, 0, 1, 1], [], []>} : vector<32x16xbf16>, vector<16x16xbf16>, vector<32x16xf32> -> vector<32x16xf32>
    %c4_90 = arith.constant 4 : index
    %c0_91 = arith.constant 0 : index
    %c0_92 = arith.constant 0 : index
    %192 = vector.load %arg1[%c4_90, %c0_91, %c0_92] : memref<6x16x16xbf16, #tpu.memory_space<vmem>>, vector<1x16x16xbf16>
    %193 = vector.shape_cast %192 : vector<1x16x16xbf16> to vector<16x16xbf16>
    %cst_93 = arith.constant dense<0.000000e+00> : vector<32x16xf32>
    %194 = tpu.matmul %179, %193, %cst_93 {dimension_numbers = #tpu.dot_dimension_numbers<[1], [0], [0], [1], [0, 0, 1, 1], [], []>} : vector<32x16xbf16>, vector<16x16xbf16>, vector<32x16xf32> -> vector<32x16xf32>
    %c5_94 = arith.constant 5 : index
    %c0_95 = arith.constant 0 : index
    %c0_96 = arith.constant 0 : index
    %195 = vector.load %arg1[%c5_94, %c0_95, %c0_96] : memref<6x16x16xbf16, #tpu.memory_space<vmem>>, vector<1x16x16xbf16>
    %196 = vector.shape_cast %195 : vector<1x16x16xbf16> to vector<16x16xbf16>
    %cst_97 = arith.constant dense<0.000000e+00> : vector<32x16xf32>
    %197 = tpu.matmul %179, %196, %cst_97 {dimension_numbers = #tpu.dot_dimension_numbers<[1], [0], [0], [1], [0, 0, 1, 1], [], []>} : vector<32x16xbf16>, vector<16x16xbf16>, vector<32x16xf32> -> vector<32x16xf32>
    %cst_98 = arith.constant 0.000000e+00 : f32
    %198 = vector.broadcast %cst_98 : f32 to vector<32x16xf32>
    %199 = arith.cmpf oge, %182, %198 : vector<32x16xf32>
    %cst_99 = arith.constant 0.00999999977 : f32
    %200 = vector.broadcast %cst_99 : f32 to vector<32x16xf32>
    %201 = arith.mulf %200, %182 : vector<32x16xf32>
    %202 = arith.select %199, %182, %201 : vector<32x16xi1>, vector<32x16xf32>
    %cst_100 = arith.constant 0.000000e+00 : f32
    %203 = vector.broadcast %cst_100 : f32 to vector<32x16xf32>
    %204 = arith.cmpf oge, %185, %203 : vector<32x16xf32>
    %cst_101 = arith.constant 0.00999999977 : f32
    %205 = vector.broadcast %cst_101 : f32 to vector<32x16xf32>
    %206 = arith.mulf %205, %185 : vector<32x16xf32>
    %207 = arith.select %204, %185, %206 : vector<32x16xi1>, vector<32x16xf32>
    %cst_102 = arith.constant 0.000000e+00 : f32
    %208 = vector.broadcast %cst_102 : f32 to vector<32x16xf32>
    %209 = arith.cmpf oge, %188, %208 : vector<32x16xf32>
    %cst_103 = arith.constant 0.00999999977 : f32
    %210 = vector.broadcast %cst_103 : f32 to vector<32x16xf32>
    %211 = arith.mulf %210, %188 : vector<32x16xf32>
    %212 = arith.select %209, %188, %211 : vector<32x16xi1>, vector<32x16xf32>
    %213 = math.absf %191 : vector<32x16xf32>
    %214 = math.absf %194 : vector<32x16xf32>
    %215 = math.absf %197 : vector<32x16xf32>
    %c1_104 = arith.constant 1 : index
    %c0_105 = arith.constant 0 : index
    %c0_106 = arith.constant 0 : index
    %216 = vector.load %arg4[%c1_104, %c0_105, %c0_106] : memref<2x32x2xf32, #tpu.memory_space<vmem>>, vector<1x32x2xf32>
    %217 = vector.shape_cast %216 : vector<1x32x2xf32> to vector<32x2xf32>
    %218 = vector.extract_strided_slice %217 {offsets = [0, 0], sizes = [32, 1], strides = [1, 1]} : vector<32x2xf32> to vector<32x1xf32>
    %219 = vector.extract_strided_slice %217 {offsets = [0, 1], sizes = [32, 1], strides = [1, 1]} : vector<32x2xf32> to vector<32x1xf32>
    %cst_107 = arith.constant 0.000000e+00 : f32
    %220 = vector.broadcast %cst_107 : f32 to vector<32x16xf32>
    %221 = arith.maximumf %173, %220 : vector<32x16xf32>
    %222 = vector.broadcast %218 : vector<32x1xf32> to vector<32x16xf32>
    %223 = arith.mulf %221, %222 : vector<32x16xf32>
    %cst_108 = arith.constant dense<0.000000e+00> : vector<16xf32>
    %224 = vector.multi_reduction <add>, %223, %cst_108 [0] : vector<32x16xf32> to vector<16xf32>
    %225 = vector.shape_cast %224 : vector<16xf32> to vector<1x16xf32>
    %cst_109 = arith.constant 0.000000e+00 : f32
    %226 = vector.broadcast %cst_109 : f32 to vector<32x16xf32>
    %227 = arith.maximumf %202, %226 : vector<32x16xf32>
    %228 = vector.broadcast %219 : vector<32x1xf32> to vector<32x16xf32>
    %229 = arith.mulf %227, %228 : vector<32x16xf32>
    %cst_110 = arith.constant dense<0.000000e+00> : vector<16xf32>
    %230 = vector.multi_reduction <add>, %229, %cst_110 [0] : vector<32x16xf32> to vector<16xf32>
    %231 = vector.shape_cast %230 : vector<16xf32> to vector<1x16xf32>
    %232 = arith.addf %225, %231 : vector<1x16xf32>
    %cst_111 = arith.constant 0.000000e+00 : f32
    %233 = vector.broadcast %cst_111 : f32 to vector<32x16xf32>
    %234 = arith.maximumf %207, %233 : vector<32x16xf32>
    %235 = vector.broadcast %219 : vector<32x1xf32> to vector<32x16xf32>
    %236 = arith.mulf %234, %235 : vector<32x16xf32>
    %cst_112 = arith.constant dense<0.000000e+00> : vector<16xf32>
    %237 = vector.multi_reduction <add>, %236, %cst_112 [0] : vector<32x16xf32> to vector<16xf32>
    %238 = vector.shape_cast %237 : vector<16xf32> to vector<1x16xf32>
    %239 = arith.addf %225, %238 : vector<1x16xf32>
    %cst_113 = arith.constant 0.000000e+00 : f32
    %240 = vector.broadcast %cst_113 : f32 to vector<32x16xf32>
    %241 = arith.maximumf %212, %240 : vector<32x16xf32>
    %242 = vector.broadcast %219 : vector<32x1xf32> to vector<32x16xf32>
    %243 = arith.mulf %241, %242 : vector<32x16xf32>
    %cst_114 = arith.constant dense<0.000000e+00> : vector<16xf32>
    %244 = vector.multi_reduction <add>, %243, %cst_114 [0] : vector<32x16xf32> to vector<16xf32>
    %245 = vector.shape_cast %244 : vector<16xf32> to vector<1x16xf32>
    %246 = arith.addf %225, %245 : vector<1x16xf32>
    %cst_115 = arith.constant 0.000000e+00 : f32
    %247 = vector.broadcast %cst_115 : f32 to vector<32x16xf32>
    %248 = arith.maximumf %213, %247 : vector<32x16xf32>
    %249 = vector.broadcast %219 : vector<32x1xf32> to vector<32x16xf32>
    %250 = arith.mulf %248, %249 : vector<32x16xf32>
    %cst_116 = arith.constant dense<0.000000e+00> : vector<16xf32>
    %251 = vector.multi_reduction <add>, %250, %cst_116 [0] : vector<32x16xf32> to vector<16xf32>
    %252 = vector.shape_cast %251 : vector<16xf32> to vector<1x16xf32>
    %253 = arith.addf %225, %252 : vector<1x16xf32>
    %cst_117 = arith.constant 0.000000e+00 : f32
    %254 = vector.broadcast %cst_117 : f32 to vector<32x16xf32>
    %255 = arith.maximumf %214, %254 : vector<32x16xf32>
    %256 = vector.broadcast %219 : vector<32x1xf32> to vector<32x16xf32>
    %257 = arith.mulf %255, %256 : vector<32x16xf32>
    %cst_118 = arith.constant dense<0.000000e+00> : vector<16xf32>
    %258 = vector.multi_reduction <add>, %257, %cst_118 [0] : vector<32x16xf32> to vector<16xf32>
    %259 = vector.shape_cast %258 : vector<16xf32> to vector<1x16xf32>
    %260 = arith.addf %225, %259 : vector<1x16xf32>
    %cst_119 = arith.constant 0.000000e+00 : f32
    %261 = vector.broadcast %cst_119 : f32 to vector<32x16xf32>
    %262 = arith.maximumf %215, %261 : vector<32x16xf32>
    %263 = vector.broadcast %219 : vector<32x1xf32> to vector<32x16xf32>
    %264 = arith.mulf %262, %263 : vector<32x16xf32>
    %cst_120 = arith.constant dense<0.000000e+00> : vector<16xf32>
    %265 = vector.multi_reduction <add>, %264, %cst_120 [0] : vector<32x16xf32> to vector<16xf32>
    %266 = vector.shape_cast %265 : vector<16xf32> to vector<1x16xf32>
    %267 = arith.addf %225, %266 : vector<1x16xf32>
    %268 = arith.maximumf %232, %239 : vector<1x16xf32>
    %269 = arith.maximumf %268, %246 : vector<1x16xf32>
    %270 = arith.maximumf %269, %253 : vector<1x16xf32>
    %271 = arith.maximumf %270, %260 : vector<1x16xf32>
    %272 = arith.maximumf %271, %267 : vector<1x16xf32>
    %273 = arith.subf %232, %272 : vector<1x16xf32>
    %274 = math.exp %273 : vector<1x16xf32>
    %275 = arith.subf %239, %272 : vector<1x16xf32>
    %276 = math.exp %275 : vector<1x16xf32>
    %277 = arith.subf %246, %272 : vector<1x16xf32>
    %278 = math.exp %277 : vector<1x16xf32>
    %279 = arith.subf %253, %272 : vector<1x16xf32>
    %280 = math.exp %279 : vector<1x16xf32>
    %281 = arith.subf %260, %272 : vector<1x16xf32>
    %282 = math.exp %281 : vector<1x16xf32>
    %283 = arith.subf %267, %272 : vector<1x16xf32>
    %284 = math.exp %283 : vector<1x16xf32>
    %285 = arith.addf %274, %276 : vector<1x16xf32>
    %286 = arith.addf %285, %278 : vector<1x16xf32>
    %287 = arith.addf %286, %280 : vector<1x16xf32>
    %288 = arith.addf %287, %282 : vector<1x16xf32>
    %289 = arith.addf %288, %284 : vector<1x16xf32>
    %290 = tpu.reciprocal %289 {approx = true} : vector<1x16xf32> -> vector<1x16xf32>
    %291 = arith.mulf %274, %290 : vector<1x16xf32>
    %292 = vector.broadcast %291 : vector<1x16xf32> to vector<32x16xf32>
    %293 = arith.mulf %202, %292 : vector<32x16xf32>
    %294 = arith.mulf %276, %290 : vector<1x16xf32>
    %295 = vector.broadcast %294 : vector<1x16xf32> to vector<32x16xf32>
    %296 = arith.mulf %207, %295 : vector<32x16xf32>
    %297 = arith.addf %293, %296 : vector<32x16xf32>
    %298 = arith.mulf %278, %290 : vector<1x16xf32>
    %299 = vector.broadcast %298 : vector<1x16xf32> to vector<32x16xf32>
    %300 = arith.mulf %212, %299 : vector<32x16xf32>
    %301 = arith.addf %297, %300 : vector<32x16xf32>
    %302 = arith.mulf %280, %290 : vector<1x16xf32>
    %303 = vector.broadcast %302 : vector<1x16xf32> to vector<32x16xf32>
    %304 = arith.mulf %213, %303 : vector<32x16xf32>
    %305 = arith.addf %301, %304 : vector<32x16xf32>
    %306 = arith.mulf %282, %290 : vector<1x16xf32>
    %307 = vector.broadcast %306 : vector<1x16xf32> to vector<32x16xf32>
    %308 = arith.mulf %214, %307 : vector<32x16xf32>
    %309 = arith.addf %305, %308 : vector<32x16xf32>
    %310 = arith.mulf %284, %290 : vector<1x16xf32>
    %311 = vector.broadcast %310 : vector<1x16xf32> to vector<32x16xf32>
    %312 = arith.mulf %215, %311 : vector<32x16xf32>
    %313 = arith.addf %309, %312 : vector<32x16xf32>
    %cst_121 = arith.constant 0.166666672 : f32
    %314 = vector.broadcast %cst_121 : f32 to vector<32x16xf32>
    %315 = arith.mulf %313, %314 : vector<32x16xf32>
    %c1_122 = arith.constant 1 : index
    %c0_123 = arith.constant 0 : index
    %c0_124 = arith.constant 0 : index
    %316 = vector.load %arg5[%c1_122, %c0_123, %c0_124] : memref<2x32x32xbf16, #tpu.memory_space<vmem>>, vector<1x32x32xbf16>
    %317 = vector.shape_cast %316 : vector<1x32x32xbf16> to vector<32x32xbf16>
    %318 = arith.truncf %315 : vector<32x16xf32> to vector<32x16xbf16>
    %cst_125 = arith.constant dense<0.000000e+00> : vector<32x16xf32>
    %319 = tpu.matmul %317, %318, %cst_125 {dimension_numbers = #tpu.dot_dimension_numbers<[1], [0], [0], [1], [0, 0, 1, 1], [], []>} : vector<32x32xbf16>, vector<32x16xbf16>, vector<32x16xf32> -> vector<32x16xf32>
    %c1_126 = arith.constant 1 : index
    %c0_127 = arith.constant 0 : index
    %c0_128 = arith.constant 0 : index
    %320 = vector.load %arg6[%c1_126, %c0_127, %c0_128] : memref<2x32x1xf32, #tpu.memory_space<vmem>>, vector<1x32x1xf32>
    %321 = vector.shape_cast %320 : vector<1x32x1xf32> to vector<32x1xf32>
    %322 = vector.broadcast %321 : vector<32x1xf32> to vector<32x16xf32>
    %323 = arith.addf %319, %322 : vector<32x16xf32>
    %cst_129 = arith.constant 0.000000e+00 : f32
    %324 = vector.broadcast %cst_129 : f32 to vector<32x16xf32>
    %325 = arith.cmpf oge, %323, %324 : vector<32x16xf32>
    %cst_130 = arith.constant 0.00999999977 : f32
    %326 = vector.broadcast %cst_130 : f32 to vector<32x16xf32>
    %327 = arith.mulf %326, %323 : vector<32x16xf32>
    %328 = arith.select %325, %323, %327 : vector<32x16xi1>, vector<32x16xf32>
    %c1_131 = arith.constant 1 : index
    %c0_132 = arith.constant 0 : index
    %c0_133 = arith.constant 0 : index
    %329 = vector.load %arg7[%c1_131, %c0_132, %c0_133] : memref<2x32x32xbf16, #tpu.memory_space<vmem>>, vector<1x32x32xbf16>
    %330 = vector.shape_cast %329 : vector<1x32x32xbf16> to vector<32x32xbf16>
    %331 = arith.truncf %328 : vector<32x16xf32> to vector<32x16xbf16>
    %cst_134 = arith.constant dense<0.000000e+00> : vector<32x16xf32>
    %332 = tpu.matmul %330, %331, %cst_134 {dimension_numbers = #tpu.dot_dimension_numbers<[1], [0], [0], [1], [0, 0, 1, 1], [], []>} : vector<32x32xbf16>, vector<32x16xbf16>, vector<32x16xf32> -> vector<32x16xf32>
    %c1_135 = arith.constant 1 : index
    %c0_136 = arith.constant 0 : index
    %c0_137 = arith.constant 0 : index
    %333 = vector.load %arg8[%c1_135, %c0_136, %c0_137] : memref<2x32x1xf32, #tpu.memory_space<vmem>>, vector<1x32x1xf32>
    %334 = vector.shape_cast %333 : vector<1x32x1xf32> to vector<32x1xf32>
    %335 = vector.broadcast %334 : vector<32x1xf32> to vector<32x16xf32>
    %336 = arith.addf %332, %335 : vector<32x16xf32>
    %cst_138 = arith.constant 0.000000e+00 : f32
    %337 = vector.broadcast %cst_138 : f32 to vector<32x16xf32>
    %338 = arith.cmpf oge, %336, %337 : vector<32x16xf32>
    %cst_139 = arith.constant 0.00999999977 : f32
    %339 = vector.broadcast %cst_139 : f32 to vector<32x16xf32>
    %340 = arith.mulf %339, %336 : vector<32x16xf32>
    %341 = arith.select %338, %336, %340 : vector<32x16xi1>, vector<32x16xf32>
    %c2_140 = arith.constant 2 : index
    %c0_141 = arith.constant 0 : index
    %c0_142 = arith.constant 0 : index
    %342 = vector.load %arg9[%c2_140, %c0_141, %c0_142] : memref<3x32x32xbf16, #tpu.memory_space<vmem>>, vector<1x32x32xbf16>
    %343 = vector.shape_cast %342 : vector<1x32x32xbf16> to vector<32x32xbf16>
    %344 = arith.truncf %341 : vector<32x16xf32> to vector<32x16xbf16>
    %cst_143 = arith.constant dense<0.000000e+00> : vector<32x16xf32>
    %345 = tpu.matmul %343, %344, %cst_143 {dimension_numbers = #tpu.dot_dimension_numbers<[1], [0], [0], [1], [0, 0, 1, 1], [], []>} : vector<32x32xbf16>, vector<32x16xbf16>, vector<32x16xf32> -> vector<32x16xf32>
    %346 = arith.addf %178, %345 : vector<32x16xf32>
    %c0_144 = arith.constant 0 : index
    %c0_145 = arith.constant 0 : index
    %347 = vector.load %arg10[%c0_144, %c0_145] : memref<32x1xf32, #tpu.memory_space<vmem>>, vector<32x1xf32>
    %348 = vector.broadcast %347 : vector<32x1xf32> to vector<32x16xf32>
    %349 = arith.addf %346, %348 : vector<32x16xf32>
    %cst_146 = arith.constant 0.000000e+00 : f32
    %350 = vector.broadcast %cst_146 : f32 to vector<32x16xf32>
    %351 = arith.cmpf oge, %349, %350 : vector<32x16xf32>
    %cst_147 = arith.constant 0.00999999977 : f32
    %352 = vector.broadcast %cst_147 : f32 to vector<32x16xf32>
    %353 = arith.mulf %352, %349 : vector<32x16xf32>
    %354 = arith.select %351, %349, %353 : vector<32x16xi1>, vector<32x16xf32>
    %c0_148 = arith.constant 0 : index
    %c0_149 = arith.constant 0 : index
    %355 = vector.load %arg11[%c0_148, %c0_149] : memref<4x32xbf16, #tpu.memory_space<vmem>>, vector<4x32xbf16>
    %356 = arith.truncf %354 : vector<32x16xf32> to vector<32x16xbf16>
    %cst_150 = arith.constant dense<0.000000e+00> : vector<4x16xf32>
    %357 = tpu.matmul %355, %356, %cst_150 {dimension_numbers = #tpu.dot_dimension_numbers<[1], [0], [0], [1], [0, 0, 1, 1], [], []>} : vector<4x32xbf16>, vector<32x16xbf16>, vector<4x16xf32> -> vector<4x16xf32>
    %c0_151 = arith.constant 0 : index
    %c0_152 = arith.constant 0 : index
    %358 = vector.load %arg12[%c0_151, %c0_152] : memref<4x1xf32, #tpu.memory_space<vmem>>, vector<4x1xf32>
    %359 = vector.broadcast %358 : vector<4x1xf32> to vector<4x16xf32>
    %360 = arith.addf %357, %359 : vector<4x16xf32>
    %361 = vector.shape_cast %360 : vector<4x16xf32> to vector<1x4x16xf32>
    %cst_153 = arith.constant dense<0xFF800000> : vector<1xf32>
    %362 = vector.multi_reduction <maximumf>, %361, %cst_153 [1, 2] : vector<1x4x16xf32> to vector<1xf32>
    %363 = vector.shape_cast %362 : vector<1xf32> to vector<1x1x1xf32>
    %364 = vector.extract %363[0, 0, 0] : f32 from vector<1x1x1xf32>
    %365 = vector.broadcast %364 : f32 to vector<1x1xf32>
    %366 = vector.shape_cast %360 : vector<4x16xf32> to vector<1x4x16xf32>
    %cst_154 = arith.constant dense<0x7F800000> : vector<1xf32>
    %367 = vector.multi_reduction <minimumf>, %366, %cst_154 [1, 2] : vector<1x4x16xf32> to vector<1xf32>
    %368 = vector.shape_cast %367 : vector<1xf32> to vector<1x1x1xf32>
    %369 = vector.extract %368[0, 0, 0] : f32 from vector<1x1x1xf32>
    %370 = vector.broadcast %369 : f32 to vector<1x1xf32>
    %371 = vector.broadcast %370 : vector<1x1xf32> to vector<4x16xf32>
    %372 = arith.subf %360, %371 : vector<4x16xf32>
    %cst_155 = arith.constant 9.99999997E-7 : f32
    %373 = vector.broadcast %cst_155 : f32 to vector<1x1xf32>
    %374 = arith.addf %365, %373 : vector<1x1xf32>
    %375 = arith.subf %374, %370 : vector<1x1xf32>
    %376 = tpu.reciprocal %375 {approx = true} : vector<1x1xf32> -> vector<1x1xf32>
    %377 = vector.broadcast %376 : vector<1x1xf32> to vector<4x16xf32>
    %378 = arith.mulf %372, %377 : vector<4x16xf32>
    %c0_156 = arith.constant 0 : index
    %c0_157 = arith.constant 0 : index
    %379 = vector.load %arg13[%c0_156, %c0_157] : memref<4x16xf32, #tpu.memory_space<vmem>>, vector<4x16xf32>
    tpu.vector_store %arg13[%c0_156, %c0_157], %378 {strides = array<i32>} : memref<4x16xf32, #tpu.memory_space<vmem>>, vector<4x16xf32>,
    return
  }
}

</mosaic_0001>

<bundles_post_ra>
// kernel: tpu_custom_call.1
= control target key start
LH: loop header
LB: loop body
LE: loop exit
PB: predicated region body
PF: predicated region fallthrough
CT: control target
= control target key end

     0   :  { %vm93_vm0 = vcmask 1043456   ;;  %vm86_vm1 = vcmask 64512   ;;  %v3442_v7 = vmov 0   ;;  %v2657_v12 = vmov 1   ;;  %s3428_s0 = inlined_call_operand.vmem [shape: f32[8,16], index: 0, kind: input, shape index: {}]   ;;  %s3429_s1 = inlined_call_operand.vmem [shape: bf16[6,16,16], index: 1, kind: input, shape index: {}]   ;;  %s3430_s2 = inlined_call_operand.vmem [shape: bf16[32,8], index: 2, kind: input, shape index: {}]   ;;  %s3431_s3 = inlined_call_operand.vmem [shape: f32[32,1], index: 3, kind: input, shape index: {}]   ;;  %s3432_s4 = inlined_call_operand.vmem [shape: f32[2,32,2], index: 4, kind: input, shape index: {}]   ;;  %s3433_s5 = inlined_call_operand.vmem [shape: bf16[2,32,32], index: 5, kind: input, shape index: {}]   ;;  %s3434_s6 = inlined_call_operand.vmem [shape: f32[2,32,1], index: 6, kind: input, shape index: {}]   ;;  %s3435_s7 = inlined_call_operand.vmem [shape: bf16[2,32,32], index: 7, kind: input, shape index: {}]   ;;  %s3436_s8 = inlined_call_operand.vmem [shape: f32[2,32,1], index: 8, kind: input, shape index: {}]   ;;  %s3437_s9 = inlined_call_operand.vmem [shape: bf16[3,32,32], index: 9, kind: input, shape index: {}]   ;;  %s3438_s10 = inlined_call_operand.vmem [shape: f32[32,1], index: 10, kind: input, shape index: {}]   ;;  %s3439_s11 = inlined_call_operand.vmem [shape: bf16[4,32], index: 11, kind: input, shape index: {}]   ;;  %s3440_s12 = inlined_call_operand.vmem [shape: f32[4,1], index: 12, kind: input, shape index: {}]   ;;  %s3441_s13 = inlined_call_operand.hbm [shape: f32[4,16], index: 13, kind: output, shape index: {}]  }
   0x1   :  { %v50_v0 = vld [vmem:[%s3428_s0] sm:$0xff]  ;;  %v54_v3 = vld [vmem:[%s3431_s3 + $0x10] sm:$0xff]  ;;  %v2578_v5 = vld [vmem:[%s3430_s2 + $0x8] sm:$0xff]   ;;  %2568 = vset.pattern.permute.xlu1 %v3442_v7  ;;  %2567 = vset.pattern.permute.xlu0 %v3442_v7 }
   0x2   :  { %v51_v1 = vpack.c.bf16 %v50_v0, %v50_v0  ;;  %v2577_v2 = vld [vmem:[%s3430_s2] sm:$0xff]   ;;  %v55_v8 = vld [vmem:[%s3431_s3 + $0x18] sm:$0xff]  ;;  %68 = vperm.xlu1 %2568, %v54_v3   ;;  %v53_v9 = vld [vmem:[%s3431_s3 + $0x8] sm:$0xff] }
   0x3   :  { %2409 = vmatprep.mubr.msk.bf16.mxu0 %vm86_vm1, %v2577_v2  ;;  %v52_v6 = vld [vmem:[%s3431_s3] sm:$0xff]  ;;  %v555_v10 = vld [vmem:[%s3432_s4 + $0x8] sm:$0xff] }
   0x4   :  { %2557 = vmatprep.subr.msk.bf16.mxu0 %vm93_vm0, %v51_v1  ;;  %v95_v4 = vsel %vm93_vm0, %v51_v1, 0  ;;  %58 = vperm.xlu0 %2567, %v52_v6   ;;  %v554_v11 = vld [vmem:[%s3432_s4] sm:$0xff] }
   0x5   :  { %2408 = vmatpush3.bf16.msra.mxu0 %v95_v4 }
   0x6   :  { %73 = vperm.xlu1 %2568, %v55_v8  }
   0x8   :  { %2410 = vmatmul.mubr.msk.bf16.vlgmr.msra.gmra.mrb[0].mxu0 %vm86_vm1, %v2578_v5  ;;  %63 = vperm.xlu0 %2567, %v53_v9  }
   0xa   :  { %569 = vperm.xlu1 %2568, %v555_v10  }
   0xc   :  { %564 = vperm.xlu0 %2567, %v554_v11  }
   0xe   :  { %2570 = vset.pattern.permute.xlu1 %v2657_v12 }
   0xf   :  { %608 = vperm.xlu1 %2570, %v555_v10  }
  0x10   :  { %2569 = vset.pattern.permute.xlu0 %v2657_v12 }
  0x11   :  { %18 = vsyncpa [#allocation3], 0  ;;  %604 = vperm.xlu0 %2569, %v554_v11   ;;  %v556_v13 = vld [vmem:[%s3432_s4 + $0x10] sm:$0xff]  ;;  %v557_v14 = vld [vmem:[%s3432_s4 + $0x18] sm:$0xff]  ;;  %vm160_vm2 = vcmask 130048   ;;  %vm870_vm3 = vcmask 261120  }
  0x12   :  { %v2773_v15 = vld [vmem:[%s3429_s1 + $0x8] sm:$0xff]   ;;  %v2778_v16 = vld [vmem:[%s3429_s1] sm:$0xff]   ;;  %v2581_v17 = vld [vmem:[%s3429_s1 + $0x10] sm:$0xff]   ;;  %s2660_s17 = smov [#allocation2]  }
  0x13   :  { %2571 = vset.pattern.permute.xlu1 %v3442_v7  ;;  %2419 = vmatprep.subr.bf16.mxu0 %v2773_v15  ;;  %v2790_v18 = vld [vmem:[%s3429_s1 + $0x18] sm:$0xff]   ;;  %v836_v19 = vld [vmem:[%s3434_s6] sm:$0xff]  ;;  %v838_v20 = vld [vmem:[%s3434_s6 + $0x10] sm:$0xff]  ;;  %s2228_s18 = sshll.u32 %s2660_s17, 4  ;;  %s2229_s18 = int_to_ptr.vmem [resolvable:$true] %s2228_s18 }
  0x14   :  { %574 = vperm.xlu1 %2571, %v556_v13   ;;  %2413 = vmatprep.subr.bf16.mxu1 %v2778_v16  ;;  %v839_v21 = vld [vmem:[%s3434_s6 + $0x18] sm:$0xff]  ;;  %v945_v22 = vld [vmem:[%s3436_s8 + $0x8] sm:$0xff]  ;;  %v2826_v51 = vld [vmem:[%s3429_s1 + $0x20] sm:$0xff]   ;;  %p2637_p1 = scmp.lt.s32.totalorder %s2229_s18, %s2229_s18 }
  0x15   :  { %612 = vperm.xlu0 %2569, %v556_v13   ;;  %2420 = vmatpush3.bf16.msra.mxu0 %v2773_v15  ;;  %v947_v23 = vld [vmem:[%s3436_s8 + $0x18] sm:$0xff]  ;;  %v2301_v24 = vld [vmem:[%s3432_s4 + $0x28] sm:$0xff]  ;;  %3462 = vst [vmem:[#allocation5_spill] sm:$0xff] %v2826_v51  ;;  %v2585_v62 = vld [vmem:[%s3433_s5] sm:$0xff]  }
  0x16   :  { %2414 = vmatpush3.bf16.msra.mxu1 %v2778_v16  ;;  %2431 = vmatprep.subr.bf16.mxu0 %v2790_v18  ;;  %v2831_v52 = vld [vmem:[%s3429_s1 + $0x28] sm:$0xff]  }
  0x17   :  { %2425 = vmatprep.subr.bf16.mxu1 %v2581_v17  ;;  %v837_v6 = vld [vmem:[%s3434_s6 + $0x8] sm:$0xff] }
  0x18   :  { %579 = vperm.xlu1 %2571, %v557_v14  }
  0x19   :  { %616 = vperm.xlu0 %2569, %v557_v14   ;;  %v944_v14 = vld [vmem:[%s3436_s8] sm:$0xff] }
  0x1c   :  { %842 = vperm.xlu1 %2571, %v836_v19  }
  0x1d   :  { %2572 = vset.pattern.permute.xlu0 %v3442_v7 }
  0x1e   :  { %847 = vperm.xlu0 %2572, %v837_v6  }
  0x20   :  { %852 = vperm.xlu1 %2571, %v838_v20  }
  0x22   :  { %950 = vperm.xlu0 %2572, %v944_v14  }
  0x24   :  { %857 = vperm.xlu1 %2571, %v839_v21  }
  0x28   :  { %955 = vperm.xlu1 %2571, %v945_v22  }
  0x2c   :  { %965 = vperm.xlu1 %2571, %v947_v23  }
  0x30   :  { %1546 = vperm.xlu1 %2571, %v2301_v24  }
  0x34   :  { %2574 = vset.pattern.permute.xlu1 %v2657_v12 }
  0x35   :  { %1585 = vperm.xlu1 %2574, %v2301_v24  }
  0x39   :  { %2575 = vset.pattern.permute.xlu1 %v3442_v7 }
  0x81   :  { %v69_v25 = vpop.permute.xlu1 %68 }
  0x83   :  { %v59_v28 = vpop.permute.xlu0 %58 }
  0x85   :  { %v74_v26 = vpop.permute.xlu1 %73 }
  0x87   :  { %v64_v30 = vpop.permute.xlu0 %63 }
  0x89   :  { %v570_v27 = vpop.permute.xlu1 %569 }
  0x8b   :  { %v565_v42 = vpop.permute.xlu0 %564 }
  0x8e   :  { %v2813_v29 = vpop.permute.xlu1 %608 }
  0x90   :  { %v2864_v61 = vpop.permute.xlu0 %604 }
  0x93   :  { %v575_v34 = vpop.permute.xlu1 %574 }
  0x94   :  { %v2869_v2 = vpop.permute.xlu0 %612 }
  0x97   :  { %v580_v48 = vpop.permute.xlu1 %579 }
  0xdb   :  { %v2411_v31 = vpop.f32.mrb[0].mxu0 }
  0xdc   :  { %v140_v32 = vadd.f32 %v2411_v31, %v69_v25  ;;  %v131_v33 = vpop.f32.mrb[1].mxu0 }
  0xdd   :  { %v132_v35 = vadd.f32 %v131_v33, %v59_v28  ;;  %v2412_v36 = vpop.f32.mrb[2].mxu0  ;;  %v946_v28 = vld [vmem:[%s3436_s8 + $0x10] sm:$0xff] }
  0xde   :  { %v143_v37 = vadd.f32 %v2412_v36, %v74_v26  ;;  %v134_v38 = vpop.f32.mrb[3].mxu0  ;;  %v560_v40 = vmax.f32 %v140_v32, 0.0  ;;  %960 = vperm.xlu0 %2572, %v946_v28  }
  0xdf   :  { %v558_v39 = vmax.f32 %v132_v35, 0.0  ;;  %v135_v41 = vadd.f32 %v134_v38, %v64_v30 }
  0xe0   :  { %v2815_v43 = vpack.c.bf16 %v143_v37, %v140_v32  ;;  %v561_v47 = vmax.f32 %v143_v37, 0.0  ;;  %v584_v49 = vmul.f32 %v575_v34, %v560_v40 }
  0xe1   :  { %v582_v44 = vmul.f32 %v565_v42, %v558_v39  ;;  %v2817_v45 = vpack.c.bf16 %v135_v41, %v132_v35  ;;  %v559_v46 = vmax.f32 %v135_v41, 0.0 }
  0xe2   :  { %v585_v55 = vmul.f32 %v580_v48, %v561_v47  ;;  %v589_v57 = vsel %vm160_vm2, %v584_v49, 0.0 }
  0xe3   :  { %v583_v50 = vmul.f32 %v570_v27, %v559_v46  ;;  %2415 = vmatprep.mubr.msk.bf16.mxu1 %vm160_vm2, %v2817_v45  ;;  %2421 = vmatprep.mubr.msk.bf16.mxu0 %vm160_vm2, %v2817_v45  ;;  %v586_v53 = vsel %vm160_vm2, %v582_v44, 0.0  ;;  %v2889_v27 = vpop.permute.xlu0 %616 }
  0xe4   :  { %2416 = vmatmul.mubr.msk.bf16.vlgmr.msra.gmra.mrb[0].mxu1 %vm160_vm2, %v2815_v43  ;;  %2422 = vmatmul.mubr.msk.bf16.vlgmr.msra.gmra.mrb[4].mxu0 %vm160_vm2, %v2815_v43  ;;  %v591_v59 = vsel %vm160_vm2, %v585_v55, 0.0 }
  0xe5   :  { %v587_v54 = vsel %vm160_vm2, %v583_v50, 0.0  ;;  %2426 = vmatpush3.bf16.msra.mxu1 %v2581_v17  ;;  %2427 = vmatprep.mubr.msk.bf16.mxu1 %vm160_vm2, %v2817_v45 }
  0xe6   :  { %v588_v56 = vadd.f32 %v587_v54, %v586_v53  ;;  %2433 = vmatprep.mubr.msk.bf16.mxu0 %vm160_vm2, %v2817_v45  ;;  %2432 = vmatpush3.bf16.msra.mxu0 %v2790_v18 }
  0xe7   :  { %2437 = vmatprep.subr.bf16.mxu1 %v2826_v51  ;;  %2443 = vmatprep.subr.bf16.mxu0 %v2831_v52 }
  0xe8   :  { %v590_v58 = vadd.f32 %v589_v57, %v588_v56  ;;  %v2300_v56 = vld [vmem:[%s3432_s4 + $0x20] sm:$0xff] }
  0xe9   :  { %1541 = vperm.xlu0 %2572, %v2300_v56  }
  0xea   :  { %v2848_v60 = vadd.f32 %v591_v59, %v590_v58 }
  0xec   :  { %2428 = vmatmul.mubr.msk.bf16.vlgmr.msra.gmra.mrb[4].mxu1 %vm160_vm2, %v2815_v43  ;;  %2434 = vmatmul.mubr.msk.bf16.vlgmr.msra.gmra.mrb[8].mxu0 %vm160_vm2, %v2815_v43  ;;  %v593_v50 = vrot.slane %v2848_v60, 4 }
  0xed   :  { %2438 = vmatpush3.bf16.msra.mxu1 %v2826_v51  ;;  %2439 = vmatprep.mubr.msk.bf16.mxu1 %vm160_vm2, %v2817_v45 }
  0xee   :  { %2445 = vmatprep.mubr.msk.bf16.mxu0 %vm160_vm2, %v2817_v45  ;;  %2444 = vmatpush3.bf16.msra.mxu0 %v2831_v52 }
  0xef   :  { %2573 = vset.pattern.permute.xlu0 %v2657_v12 }
  0xf0   :  { %1581 = vperm.xlu0 %2573, %v2300_v56  }
  0xf4   :  { %2440 = vmatmul.mubr.msk.bf16.vlgmr.msra.gmra.mrb[8].mxu1 %vm160_vm2, %v2815_v43  ;;  %2446 = vmatmul.mubr.msk.bf16.vlgmr.msra.gmra.mrb[12].mxu0 %vm160_vm2, %v2815_v43 }
  0xf5   :  { %2453 = vmatprep.mubr.msk.bf16.mxu1 %vm870_vm3, %v2585_v62 }
 0x1b7   :  { %v2417_v63 = vpop.f32.mrb[0].mxu1  ;;  %v2423_v0 = vpop.f32.mrb[4].mxu0 }
 0x1b8   :  { %v512_v1 = vmul.f32 0.01, %v2417_v63  ;;  %vm508_vm4 = vcmp.ge.f32.partialorder %v2417_v63, 0.0  ;;  %v524_v3 = vmul.f32 0.01, %v2423_v0  ;;  %v201_v4 = vpop.f32.mrb[1].mxu1 }
 0x1b9   :  { %v259_v5 = vpop.f32.mrb[5].mxu0  ;;  %vm520_vm5 = vcmp.ge.f32.partialorder %v2423_v0, 0.0  ;;  %vm506_vm6 = vcmp.ge.f32.partialorder %v201_v4, 0.0  ;;  %v510_v8 = vmul.f32 0.01, %v201_v4  ;;  %v2418_v9 = vpop.f32.mrb[2].mxu1 }
 0x1ba   :  { %v2424_v10 = vpop.f32.mrb[6].mxu0  ;;  %vm518_vm7 = vcmp.ge.f32.partialorder %v259_v5, 0.0  ;;  %v522_v11 = vmul.f32 0.01, %v259_v5  ;;  %v204_v13 = vpop.f32.mrb[3].mxu1  ;;  %v2878_v17 = vsel %vm508_vm4, %v2417_v63, %v512_v1  ;;  %vm509_vm8 = vcmp.ge.f32.partialorder %v2418_v9, 0.0 }
 0x1bb   :  { %v2880_v19 = vsel %vm506_vm6, %v201_v4, %v510_v8  ;;  %v513_v20 = vmul.f32 0.01, %v2418_v9  ;;  %v262_v21 = vpop.f32.mrb[7].mxu0  ;;  %v2882_v22 = vsel %vm520_vm5, %v2423_v0, %v524_v3  ;;  %v525_v25 = vmul.f32 0.01, %v2424_v10 }
 0x1bc   :  { %v599_v23 = vmax.f32 %v2880_v19, 0.0  ;;  %v2885_v24 = vsel %vm518_vm7, %v259_v5, %v522_v11  ;;  %vm521_vm9 = vcmp.ge.f32.partialorder %v2424_v10, 0.0  ;;  %vm507_vm10 = vcmp.ge.f32.partialorder %v204_v13, 0.0 }
 0x1bd   :  { %v2887_v26 = vsel %vm509_vm8, %v2418_v9, %v513_v20  ;;  %v601_v30 = vmax.f32 %v2878_v17, 0.0  ;;  %v637_v31 = vmax.f32 %v2885_v24, 0.0  ;;  %v511_v32 = vmul.f32 0.01, %v204_v13 }
 0x1be   :  { %v639_v35 = vmax.f32 %v2882_v22, 0.0  ;;  %v619_v36 = vmul.f32 %v2864_v61, %v599_v23  ;;  %vm519_vm11 = vcmp.ge.f32.partialorder %v262_v21, 0.0  ;;  %v602_v39 = vmax.f32 %v2887_v26, 0.0 }
 0x1bf   :  { %v2429_v33 = vpop.f32.mrb[4].mxu1  ;;  %v2896_v34 = vpop.f32.mrb[8].mxu0  ;;  %v2904_v40 = vsel %vm521_vm9, %v2424_v10, %v525_v25  ;;  %v2907_v41 = vsel %vm507_vm10, %v204_v13, %v511_v32  ;;  %v523_v42 = vmul.f32 0.01, %v262_v21  ;;  %v641_v53 = vmul.f32 %v637_v31, %v2864_v61 }
 0x1c0   :  { %v317_v37 = vpop.f32.mrb[5].mxu1  ;;  %v2900_v38 = vpop.f32.mrb[9].mxu0  ;;  %v600_v47 = vmax.f32 %v2907_v41, 0.0  ;;  %v621_v54 = vmul.f32 %v2869_v2, %v601_v30  ;;  %v640_v57 = vmax.f32 %v2904_v40, 0.0  ;;  %v643_v58 = vmul.f32 %v639_v35, %v2869_v2 }
 0x1c1   :  { %v2430_v44 = vpop.f32.mrb[6].mxu1  ;;  %v2909_v46 = vpop.f32.mrb[10].mxu0  ;;  %v2920_v55 = vsel %vm519_vm11, %v262_v21, %v523_v42  ;;  %v623_v63 = vsel %vm160_vm2, %v619_v36, 0.0  ;;  %v622_v0 = vmul.f32 %v2889_v27, %v602_v39  ;;  %v536_v1 = vmul.f32 0.01, %v2429_v33 }
 0x1c2   :  { %v2912_v48 = vpop.f32.mrb[7].mxu1  ;;  %v2914_v49 = vpop.f32.mrb[11].mxu0  ;;  %v620_v59 = vmul.f32 %v2813_v29, %v600_v47  ;;  %v638_v62 = vmax.f32 %v2920_v55, 0.0  ;;  %v534_v3 = vmul.f32 0.01, %v317_v37  ;;  %vm530_vm12 = vcmp.ge.f32.partialorder %v317_v37, 0.0 }
 0x1c3   :  { %v3451_v6 = vand.u32 2147483647, %v2900_v38  ;;  %v645_v8 = vsel %vm160_vm2, %v641_v53, 0.0  ;;  %v626_v10 = vsel %vm160_vm2, %v621_v54, 0.0  ;;  %vm532_vm13 = vcmp.ge.f32.partialorder %v2429_v33, 0.0 }
 0x1c4   :  { %v624_v4 = vsel %vm160_vm2, %v620_v59, 0.0  ;;  %v642_v5 = vmul.f32 %v638_v62, %v2813_v29  ;;  %v644_v20 = vmul.f32 %v640_v57, %v2889_v27  ;;  %v3445_v21 = vand.u32 2147483647, %v2896_v34 }
 0x1c5   :  { %v625_v9 = vadd.f32 %v624_v4, %v623_v63  ;;  %vm533_vm14 = vcmp.ge.f32.partialorder %v2430_v44, 0.0  ;;  %v2948_v31 = vsel %vm530_vm12, %v317_v37, %v534_v3  ;;  %v537_v32 = vmul.f32 0.01, %v2430_v44 }
 0x1c6   :  { %v646_v14 = vsel %vm160_vm2, %v642_v5, 0.0  ;;  %v648_v39 = vsel %vm160_vm2, %v643_v58, 0.0  ;;  %v628_v42 = vsel %vm160_vm2, %v622_v0, 0.0  ;;  %v2957_v47 = vsel %vm532_vm13, %v2429_v33, %v536_v1 }
 0x1c7   :  { %v2936_v11 = vpop.f32.mrb[8].mxu1  ;;  %v2938_v13 = vpop.f32.mrb[12].mxu0  ;;  %v627_v28 = vadd.f32 %v626_v10, %v625_v9  ;;  %v647_v30 = vadd.f32 %v646_v14, %v645_v8  ;;  %v681_v53 = vmax.f32 %v3451_v6, 0.0  ;;  %v2967_v62 = vsel %vm533_vm14, %v2430_v44, %v537_v32 }
 0x1c8   :  { %v2943_v23 = vpop.f32.mrb[9].mxu1  ;;  %v2945_v25 = vpop.f32.mrb[13].mxu0  ;;  %v3443_v58 = vand.u32 2147483647, %v2909_v46  ;;  %v650_v33 = vsel %vm160_vm2, %v644_v20, 0.0  ;;  %v683_v63 = vmax.f32 %v3445_v21, 0.0 }
 0x1c9   :  { %v2950_v35 = vpop.f32.mrb[10].mxu1  ;;  %v2952_v36 = vpop.f32.mrb[14].mxu0  ;;  %v649_v37 = vadd.f32 %v648_v39, %v647_v30  ;;  %v629_v59 = vadd.f32 %v628_v42, %v627_v28  ;;  %v659_v0 = vmax.f32 %v2948_v31, 0.0  ;;  %vm531_vm15 = vcmp.ge.f32.partialorder %v2912_v48, 0.0 }
 0x1ca   :  { %v2961_v54 = vpop.f32.mrb[11].mxu1  ;;  %v2963_v57 = vpop.f32.mrb[15].mxu0  ;;  %v661_v12 = vmax.f32 %v2957_v47, 0.0  ;;  %v535_v3 = vmul.f32 0.01, %v2912_v48  ;;  %v685_v5 = vmul.f32 %v681_v53, %v2864_v61  ;;  %v662_v56 = vmax.f32 %v2967_v62, 0.0 }
 0x1cb   :  { %v651_v1 = vadd.f32 %v650_v33, %v649_v37  ;;  %v3454_v44 = vand.u32 2147483647, %v2914_v49  ;;  %v630_v4 = vrot.slane %v629_v59, 4  ;;  %v684_v9 = vmax.f32 %v3443_v58, 0.0 }
 0x1cc   :  { %v2983_v10 = vsel %vm531_vm15, %v2912_v48, %v535_v3  ;;  %v663_v20 = vmul.f32 %v659_v0, %v2864_v61  ;;  %v594_v30 = vadd.f32 %v593_v50, %v2848_v60  ;;  %v665_v32 = vmul.f32 %v661_v12, %v2869_v2 }
 0x1cd   :  { %v652_v8 = vrot.slane %v651_v1, 4  ;;  %v682_v14 = vmax.f32 %v3454_v44, 0.0  ;;  %v660_v28 = vmax.f32 %v2983_v10, 0.0  ;;  %v687_v39 = vmul.f32 %v683_v63, %v2869_v2 }
 0x1ce   :  { %v631_v53 = vadd.f32 %v630_v4, %v629_v59  ;;  %v689_v48 = vsel %vm160_vm2, %v685_v5, 0.0  ;;  %v666_v37 = vmul.f32 %v662_v56, %v2889_v27  ;;  %v688_v3 = vmul.f32 %v684_v9, %v2889_v27 }
 0x1cf   :  { %v686_v42 = vmul.f32 %v682_v14, %v2813_v29  ;;  %v664_v33 = vmul.f32 %v660_v28, %v2813_v29  ;;  %v653_v0 = vadd.f32 %v652_v8, %v651_v1  ;;  %v3449_v60 = vand.u32 2147483647, %v2943_v23 }
 0x1d0   :  { %v667_v50 = vsel %vm160_vm2, %v663_v20, 0.0  ;;  %v3444_v59 = vand.u32 2147483647, %v2945_v25  ;;  %v670_v4 = vsel %vm160_vm2, %v665_v32, 0.0  ;;  %v692_v5 = vsel %vm160_vm2, %v687_v39, 0.0 }
 0x1d1   :  { %v690_v7 = vsel %vm160_vm2, %v686_v42, 0.0  ;;  %v668_v63 = vsel %vm160_vm2, %v664_v33, 0.0  ;;  %v3447_v1 = vand.u32 2147483647, %v2936_v11  ;;  %v632_v8 = vrot.slane %v631_v53, 2 }
 0x1d2   :  { %v691_v12 = vadd.f32 %v690_v7, %v689_v48  ;;  %v669_v56 = vadd.f32 %v668_v63, %v667_v50  ;;  %v672_v9 = vsel %vm160_vm2, %v666_v37, 0.0  ;;  %v3446_v28 = vand.u32 2147483647, %v2938_v13 }
 0x1d3   :  { %v654_v42 = vrot.slane %v653_v0, 2  ;;  %v694_v20 = vsel %vm160_vm2, %v688_v3, 0.0  ;;  %v703_v7 = vmax.f32 %v3449_v60, 0.0  ;;  %v725_v32 = vmax.f32 %v3444_v59, 0.0 }
 0x1d4   :  { %v693_v14 = vadd.f32 %v692_v5, %v691_v12  ;;  %v671_v33 = vadd.f32 %v670_v4, %v669_v56  ;;  %v3448_v39 = vand.u32 2147483647, %v2950_v35  ;;  %v3450_v50 = vand.u32 2147483647, %v2952_v36 }
 0x1d5   :  { %v595_v63 = vrot.slane %v594_v30, 2  ;;  %v705_v12 = vmax.f32 %v3447_v1, 0.0  ;;  %v633_v5 = vadd.f32 %v632_v8, %v631_v53  ;;  %v727_v3 = vmax.f32 %v3446_v28, 0.0 }
 0x1d6   :  { %v695_v48 = vadd.f32 %v694_v20, %v693_v14  ;;  %v673_v37 = vadd.f32 %v672_v9, %v671_v33  ;;  %v3453_v4 = vand.u32 2147483647, %v2961_v54  ;;  %v655_v56 = vadd.f32 %v654_v42, %v653_v0 }
 0x1d7   :  { %v707_v20 = vmul.f32 %v703_v7, %v2864_v61  ;;  %v3452_v59 = vand.u32 2147483647, %v2963_v57  ;;  %v729_v21 = vmul.f32 %v725_v32, %v2864_v61  ;;  %v706_v9 = vmax.f32 %v3448_v39, 0.0 }
 0x1d8   :  { %v696_v58 = vrot.slane %v695_v48, 4  ;;  %v674_v14 = vrot.slane %v673_v37, 4  ;;  %v728_v53 = vmax.f32 %v3450_v50, 0.0  ;;  %v704_v8 = vmax.f32 %v3453_v4, 0.0 }
 0x1d9   :  { %v596_v33 = vadd.f32 %v595_v63, %v594_v30  ;;  %v726_v0 = vmax.f32 %v3452_v59, 0.0  ;;  %v634_v42 = vrot.slane %v633_v5, 1  ;;  %v709_v7 = vmul.f32 %v705_v12, %v2869_v2 }
 0x1da   :  { %v675_v28 = vadd.f32 %v674_v14, %v673_v37  ;;  %v697_v1 = vadd.f32 %v696_v58, %v695_v48  ;;  %v731_v61 = vmul.f32 %v727_v3, %v2869_v2  ;;  %v708_v32 = vmul.f32 %v704_v8, %v2813_v29 }
 0x1db   :  { %v656_v39 = vrot.slane %v655_v56, 1  ;;  %v711_v50 = vsel %vm160_vm2, %v707_v20, 0.0  ;;  %v730_v6 = vmul.f32 %v726_v0, %v2813_v29  ;;  %v733_v30 = vsel %vm160_vm2, %v729_v21, 0.0 }
 0x1dc   :  { %v676_v60 = vrot.slane %v675_v28, 2  ;;  %v710_v58 = vmul.f32 %v706_v9, %v2889_v27  ;;  %v732_v48 = vmul.f32 %v728_v53, %v2889_v27  ;;  %v712_v63 = vsel %vm160_vm2, %v708_v32, 0.0 }
 0x1dd   :  { %v698_v12 = vrot.slane %v697_v1, 2  ;;  %v713_v14 = vadd.f32 %v712_v63, %v711_v50  ;;  %v734_v2 = vsel %vm160_vm2, %v730_v6, 0.0  ;;  %v714_v3 = vsel %vm160_vm2, %v709_v7, 0.0 }
 0x1de   :  { %v677_v37 = vadd.f32 %v676_v60, %v675_v28  ;;  %v735_v8 = vadd.f32 %v734_v2, %v733_v30  ;;  %v597_v59 = vrot.slane %v596_v33, 1  ;;  %v736_v29 = vsel %vm160_vm2, %v731_v61, 0.0 }
 0x1df   :  { %v715_v0 = vadd.f32 %v714_v3, %v713_v14  ;;  %v635_v21 = vadd.f32 %v634_v42, %v633_v5  ;;  %v716_v9 = vsel %vm160_vm2, %v710_v58, 0.0  ;;  %v657_v27 = vadd.f32 %v656_v39, %v655_v56 }
 0x1e0   :  { %v678_v20 = vrot.slane %v677_v37, 1  ;;  %v737_v4 = vadd.f32 %v736_v29, %v735_v8  ;;  %v699_v53 = vadd.f32 %v698_v12, %v697_v1  ;;  %v738_v60 = vsel %vm160_vm2, %v732_v48, 0.0 }
 0x1e1   :  { %v717_v28 = vadd.f32 %v716_v9, %v715_v0  ;;  %v598_v32 = vadd.f32 %v597_v59, %v596_v33 }
 0x1e2   :  { %v739_v50 = vadd.f32 %v738_v60, %v737_v4  ;;  %v679_v6 = vadd.f32 %v678_v20, %v677_v37  ;;  %v700_v44 = vrot.slane %v699_v53, 1 }
 0x1e3   :  { %v718_v63 = vrot.slane %v717_v28, 4  ;;  %v636_v30 = vadd.f32 %v635_v21, %v598_v32  ;;  %v658_v2 = vadd.f32 %v657_v27, %v598_v32 }
 0x1e4   :  { %v740_v7 = vrot.slane %v739_v50, 4  ;;  %v680_v14 = vadd.f32 %v679_v6, %v598_v32  ;;  %v701_v3 = vadd.f32 %v700_v44, %v699_v53 }
 0x1e5   :  { %v719_v51 = vadd.f32 %v718_v63, %v717_v28  ;;  %v747_v58 = vmax.f32 %v636_v30, %v658_v2 }
 0x1e6   :  { %v741_v61 = vadd.f32 %v740_v7, %v739_v50  ;;  %v702_v4 = vadd.f32 %v701_v3, %v598_v32 }
 0x1e7   :  { %v720_v5 = vrot.slane %v719_v51, 2  ;;  %v748_v56 = vmax.f32 %v747_v58, %v680_v14 }
 0x1e8   :  { %v742_v42 = vrot.slane %v741_v61, 2 }
 0x1e9   :  { %v721_v39 = vadd.f32 %v720_v5, %v719_v51  ;;  %v749_v37 = vmax.f32 %v748_v56, %v702_v4 }
 0x1ea   :  { %v743_v1 = vadd.f32 %v742_v42, %v741_v61 }
 0x1eb   :  { %v722_v48 = vrot.slane %v721_v39, 1 }
 0x1ec   :  { %v744_v12 = vrot.slane %v743_v1, 1 }
 0x1ed   :  { %v723_v59 = vadd.f32 %v722_v48, %v721_v39 }
 0x1ee   :  { %v745_v33 = vadd.f32 %v744_v12, %v743_v1 }
 0x1ef   :  { %v724_v8 = vadd.f32 %v723_v59, %v598_v32 }
 0x1f0   :  { %v746_v29 = vadd.f32 %v745_v33, %v598_v32 }
 0x1f1   :  { %v750_v20 = vmax.f32 %v749_v37, %v724_v8 }
 0x1f3   :  { %v751_v0 = vmax.f32 %v750_v20, %v746_v29 }
 0x1f5   :  { %v752_v21 = vsub.f32 %v636_v30, %v751_v0  ;;  %v755_v9 = vsub.f32 %v658_v2, %v751_v0  ;;  %v758_v27 = vsub.f32 %v680_v14, %v751_v0  ;;  %v761_v60 = vsub.f32 %v702_v4, %v751_v0 }
 0x1f6   :  { %v764_v51 = vsub.f32 %v724_v8, %v751_v0  ;;  %v767_v6 = vsub.f32 %v746_v29, %v751_v0 }
 0x1f7   :  { %v753_v28 = vmul.f32 1.442695, %v752_v21  ;;  %v756_v50 = vmul.f32 1.442695, %v755_v9  ;;  %v759_v44 = vmul.f32 1.442695, %v758_v27 }
 0x1f8   :  { %v762_v53 = vmul.f32 1.442695, %v761_v60  ;;  %v765_v63 = vmul.f32 1.442695, %v764_v51  ;;  %v768_v7 = vmul.f32 1.442695, %v767_v6 }
 0x1f9   :  { %2599 = vpow2.f32 %v753_v28  ;;  %v3465_v6 = vand.u32 2147483647, %v2900_v38 }
 0x1fa   :  { %2601 = vpow2.f32 %v756_v50 }
 0x1fb   :  { %2603 = vpow2.f32 %v759_v44 }
 0x1fc   :  { %2605 = vpow2.f32 %v762_v53 }
 0x1fd   :  { %2607 = vpow2.f32 %v765_v63 }
 0x1fe   :  { %2609 = vpow2.f32 %v768_v7 }
 0x203   :  { %v2600_v32 = vpop.eup %2599 }
 0x204   :  { %v2602_v61 = vpop.eup %2601 }
 0x205   :  { %v770_v30 = vadd.f32 %v2602_v61, %v2600_v32  ;;  %v2604_v2 = vpop.eup %2603 }
 0x206   :  { %v2606_v5 = vpop.eup %2605 }
 0x207   :  { %v771_v14 = vadd.f32 %v2604_v2, %v770_v30  ;;  %v2608_v58 = vpop.eup %2607 }
 0x208   :  { %v2610_v39 = vpop.eup %2609 }
 0x209   :  { %v772_v42 = vadd.f32 %v2606_v5, %v771_v14 }
 0x20b   :  { %v773_v3 = vadd.f32 %v2608_v58, %v772_v42 }
 0x20d   :  { %v774_v1 = vadd.f32 %v2610_v39, %v773_v3  ;;  %v3470_v3 = vand.u32 2147483647, %v2945_v25 }
 0x20f   :  { %2611 = vrcp.f32 %v774_v1 }
 0x219   :  { %v2612_v56 = vpop.eup %2611 }
 0x21a   :  { %v776_v48 = vmul.f32 %v2612_v56, %v2600_v32  ;;  %v781_v12 = vmul.f32 %v2612_v56, %v2602_v61  ;;  %v790_v4 = vmul.f32 %v2612_v56, %v2604_v2  ;;  %v799_v37 = vmul.f32 %v2612_v56, %v2606_v5 }
 0x21b   :  { %v808_v8 = vmul.f32 %v2612_v56, %v2608_v58  ;;  %v817_v9 = vmul.f32 %v2612_v56, %v2610_v39 }
 0x21c   :  { %v778_v59 = vmul.f32 %v776_v48, %v2907_v41  ;;  %v783_v33 = vmul.f32 %v781_v12, %v2920_v55  ;;  %v777_v20 = vmul.f32 %v776_v48, %v2880_v19  ;;  %v782_v29 = vmul.f32 %v781_v12, %v2885_v24 }
 0x21d   :  { %v792_v21 = vmul.f32 %v790_v4, %v2983_v10  ;;  %v791_v60 = vmul.f32 %v790_v4, %v2948_v31  ;;  %v779_v28 = vmul.f32 %v776_v48, %v2878_v17  ;;  %v780_v50 = vmul.f32 %v776_v48, %v2887_v26 }
 0x21e   :  { %v787_v0 = vadd.f32 %v783_v33, %v778_v59  ;;  %v786_v27 = vadd.f32 %v782_v29, %v777_v20  ;;  %v3463_v55 = vand.u32 2147483647, %v2914_v49  ;;  %v784_v51 = vmul.f32 %v781_v12, %v2882_v22 }
 0x21f   :  { %v785_v19 = vmul.f32 %v781_v12, %v2904_v40  ;;  %v3464_v24 = vand.u32 2147483647, %v2961_v54  ;;  %v800_v63 = vmul.f32 %v799_v37, %v3465_v6  ;;  %v793_v31 = vmul.f32 %v790_v4, %v2957_v47 }
 0x220   :  { %v796_v41 = vadd.f32 %v792_v21, %v787_v0  ;;  %v801_v44 = vmul.f32 %v799_v37, %v3463_v55  ;;  %v795_v10 = vadd.f32 %v791_v60, %v786_v27  ;;  %v788_v7 = vadd.f32 %v784_v51, %v779_v28 }
 0x221   :  { %v810_v53 = vmul.f32 %v808_v8, %v3464_v24  ;;  %v789_v26 = vadd.f32 %v785_v19, %v780_v50  ;;  %v794_v32 = vmul.f32 %v790_v4, %v2967_v62  ;;  %v3466_v49 = vand.u32 2147483647, %v2963_v57  ;;  %v843_v50 = vpop.permute.xlu1 %842 }
 0x222   :  { %v805_v17 = vadd.f32 %v801_v44, %v796_v41  ;;  %v804_v22 = vadd.f32 %v800_v63, %v795_v10  ;;  %v3467_v40 = vand.u32 2147483647, %v2943_v23  ;;  %v3468_v54 = vand.u32 2147483647, %v2896_v34  ;;  %v848_v10 = vpop.permute.xlu0 %847 }
 0x223   :  { %v819_v61 = vmul.f32 %v817_v9, %v3466_v49  ;;  %v797_v38 = vadd.f32 %v793_v31, %v788_v7  ;;  %v798_v5 = vadd.f32 %v794_v32, %v789_v26  ;;  %v3469_v47 = vand.u32 2147483647, %v2909_v46 }
 0x224   :  { %v809_v30 = vmul.f32 %v808_v8, %v3467_v40  ;;  %v802_v2 = vmul.f32 %v799_v37, %v3468_v54  ;;  %v814_v14 = vadd.f32 %v810_v53, %v805_v17  ;;  %v818_v62 = vmul.f32 %v817_v9, %v3470_v3 }
 0x225   :  { %v803_v42 = vmul.f32 %v799_v37, %v3469_v47  ;;  %v3471_v57 = vand.u32 2147483647, %v2936_v11  ;;  %v3472_v48 = vand.u32 2147483647, %v2950_v35  ;;  %v3473_v4 = vand.u32 2147483647, %v2938_v13  ;;  %v853_v41 = vpop.permute.xlu1 %852 }
 0x226   :  { %v813_v58 = vadd.f32 %v809_v30, %v804_v22  ;;  %v823_v1 = vadd.f32 %v819_v61, %v814_v14  ;;  %v806_v56 = vadd.f32 %v802_v2, %v797_v38  ;;  %v3474_v20 = vand.u32 2147483647, %v2952_v36  ;;  %v2586_v13 = vld [vmem:[%s3433_s5 + $0x8] sm:$0xff]   ;;  %v2587_v36 = vld [vmem:[%s3435_s7] sm:$0xff]   ;;  %v2589_v14 = vld [vmem:[%s3437_s9 + $0x10] sm:$0xff]  }
 0x227   :  { %v811_v39 = vmul.f32 %v808_v8, %v3471_v57  ;;  %v807_v23 = vadd.f32 %v803_v42, %v798_v5  ;;  %v812_v34 = vmul.f32 %v808_v8, %v3472_v48  ;;  %v820_v59 = vmul.f32 %v817_v9, %v3473_v4  ;;  %2461 = vmatprep.mubr.msk.bf16.mxu0 %vm870_vm3, %v2587_v36  ;;  %v2302_v8 = vld [vmem:[%s3432_s4 + $0x30] sm:$0xff]  ;;  %v2588_v2 = vld [vmem:[%s3435_s7 + $0x8] sm:$0xff]   ;;  %v2308_v38 = vld [vmem:[%s3434_s6 + $0x20] sm:$0xff] }
 0x228   :  { %v822_v12 = vadd.f32 %v818_v62, %v813_v58  ;;  %v827_v33 = vmul.f32 0.16666667, %v823_v1  ;;  %v821_v25 = vmul.f32 %v817_v9, %v3474_v20  ;;  %1551 = vperm.xlu1 %2575, %v2302_v8   ;;  %1589 = vperm.xlu0 %2573, %v2302_v8   ;;  %v2303_v9 = vld [vmem:[%s3432_s4 + $0x38] sm:$0xff]  ;;  %v3475_v28 = vmov 0   ;;  %v2310_v5 = vld [vmem:[%s3434_s6 + $0x30] sm:$0xff]  ;;  %v2102_v42 = vld [vmem:[%s3438_s10 + $0x8] sm:$0xff] }
 0x229   :  { %v815_v46 = vadd.f32 %v811_v39, %v806_v56  ;;  %v816_v37 = vadd.f32 %v812_v34, %v807_v23  ;;  %v858_v19 = vpop.permute.xlu1 %857  ;;  %v2323_v47 = vld [vmem:[%s3436_s8 + $0x38] sm:$0xff]  ;;  %v951_v39 = vpop.permute.xlu0 %950 }
 0x22a   :  { %v826_v29 = vmul.f32 0.16666667, %v822_v12  ;;  %v2104_v58 = vld [vmem:[%s3438_s10 + $0x18] sm:$0xff] }
 0x22b   :  { %v824_v0 = vadd.f32 %v820_v59, %v815_v46  ;;  %v825_v11 = vadd.f32 %v821_v25, %v816_v37 }
 0x22c   :  { %v834_v21 = vpack.c.bf16 %v827_v33, %v826_v29  ;;  %1556 = vperm.xlu1 %2575, %v2303_v9   ;;  %1593 = vperm.xlu0 %2573, %v2303_v9  }
 0x22d   :  { %v828_v27 = vmul.f32 0.16666667, %v824_v0  ;;  %v829_v60 = vmul.f32 0.16666667, %v825_v11  ;;  %v956_v3 = vpop.permute.xlu1 %955  ;;  %v961_v56 = vpop.permute.xlu0 %960 }
 0x22e   :  { %2449 = vmatprep.subr.bf16.mxu1 %v834_v21 }
 0x22f   :  { %2450 = vmatpush3.bf16.msra.mxu1 %v834_v21  ;;  %v835_v35 = vpack.c.bf16 %v829_v60, %v828_v27 }
 0x230   :  { %2576 = vset.pattern.permute.xlu0 %v3475_v28  ;;  %1821 = vperm.xlu1 %2575, %v2308_v38  }
 0x231   :  { %2451 = vmatprep.subr.bf16.mxu1 %v835_v35  ;;  %v966_v62 = vpop.permute.xlu1 %965 }
 0x233   :  { %2452 = vmatpush3.bf16.msra.mxu1 %v835_v35 }
 0x234   :  { %1831 = vperm.xlu1 %2575, %v2310_v5   ;;  %v2593_v5 = vld [vmem:[%s3433_s5 + $0x10] sm:$0xff]  }
 0x235   :  { %v1547_v57 = vpop.permute.xlu1 %1546 }
 0x236   :  { %2454 = vmatmul.mubr.msk.bf16.vlgmr.msra.gmra.mrb[12].mxu1 %vm870_vm3, %v2586_v13  ;;  %v1542_v13 = vpop.permute.xlu0 %1541 }
 0x237   :  { %2469 = vmatprep.mubr.msk.bf16.mxu1 %vm870_vm3, %v2589_v14 }
 0x239   :  { %v3129_v1 = vpop.permute.xlu1 %1585 }
 0x2a7   :  { %v1552_v25 = vpop.permute.xlu1 %1551 }
 0x309   :  { %v2455_v55 = vpop.f32.mrb[12].mxu1 }
 0x30a   :  { %v920_v44 = vadd.f32 %v2455_v55, %v853_v41  ;;  %v911_v51 = vpop.f32.mrb[13].mxu1  ;;  %v1557_v55 = vpop.permute.xlu1 %1556 }
 0x30b   :  { %v912_v24 = vadd.f32 %v911_v51, %v843_v50  ;;  %v2456_v53 = vpop.f32.mrb[14].mxu1 }
 0x30c   :  { %v932_v6 = vmul.f32 0.01, %v920_v44  ;;  %v923_v63 = vadd.f32 %v2456_v53, %v858_v19  ;;  %v914_v31 = vpop.f32.mrb[15].mxu1  ;;  %vm928_vm0 = vcmp.ge.f32.partialorder %v920_v44, 0.0 }
 0x30d   :  { %v930_v17 = vmul.f32 0.01, %v912_v24  ;;  %v915_v7 = vadd.f32 %v914_v31, %v848_v10  ;;  %vm926_vm1 = vcmp.ge.f32.partialorder %v912_v24, 0.0  ;;  %v2590_v31 = vld [vmem:[%s3437_s9 + $0x18] sm:$0xff]  }
 0x30e   :  { %vm929_vm4 = vcmp.ge.f32.partialorder %v923_v63, 0.0  ;;  %v933_v26 = vmul.f32 0.01, %v923_v63  ;;  %v936_v49 = vsel %vm928_vm0, %v920_v44, %v932_v6  ;;  %v2629_v6 = vld [vmem:[%s3429_s1 + $0x8] sm:$0xff]  }
 0x30f   :  { %vm927_vm5 = vcmp.ge.f32.partialorder %v915_v7, 0.0  ;;  %v931_v32 = vmul.f32 0.01, %v915_v7  ;;  %v934_v22 = vsel %vm926_vm1, %v912_v24, %v930_v17 }
 0x310   :  { %v937_v61 = vsel %vm929_vm4, %v923_v63, %v933_v26 }
 0x311   :  { %v935_v40 = vsel %vm927_vm5, %v915_v7, %v931_v32  ;;  %v943_v30 = vpack.c.bf16 %v937_v61, %v936_v49  ;;  %v2591_v32 = vld [vmem:[%s3437_s9] sm:$0xff]   ;;  %v2592_v49 = vld [vmem:[%s3437_s9 + $0x8] sm:$0xff]  }
 0x312   :  { %v942_v54 = vpack.c.bf16 %v935_v40, %v934_v22 }
 0x314   :  { %2457 = vmatprep.subr.bf16.mxu0 %v942_v54 }
 0x315   :  { %2458 = vmatpush3.bf16.msra.mxu0 %v942_v54 }
 0x316   :  { %2459 = vmatprep.subr.bf16.mxu0 %v943_v30 }
 0x319   :  { %2460 = vmatpush3.bf16.msra.mxu0 %v943_v30 }
 0x31a   :  { %2481 = vmatprep.subr.bf16.mxu0 %v2778_v16 }
 0x31c   :  { %2462 = vmatmul.mubr.msk.bf16.vlgmr.msra.gmra.mrb[16].mxu0 %vm870_vm3, %v2588_v2 }
 0x31d   :  { %2482 = vmatpush3.bf16.msra.mxu0 %v2778_v16  ;;  %v2321_v16 = vld [vmem:[%s3436_s8 + $0x28] sm:$0xff] }
 0x31e   :  { %2487 = vmatprep.subr.bf16.mxu0 %v2773_v15  ;;  %v2311_v15 = vld [vmem:[%s3434_s6 + $0x38] sm:$0xff] }
 0x31f   :  { %1836 = vperm.xlu1 %2575, %v2311_v15  }
 0x323   :  { %1935 = vperm.xlu1 %2575, %v2321_v16  }
 0x327   :  { %1945 = vperm.xlu1 %2575, %v2323_v47  }
 0x32b   :  { %2112 = vperm.xlu1 %2575, %v2102_v42   ;;  %v3187_v42 = vpop.permute.xlu0 %1581 }
 0x32f   :  { %2122 = vperm.xlu1 %2575, %v2104_v58  }
 0x3ef   :  { %v2463_v23 = vpop.f32.mrb[16].mxu0 }
 0x3f0   :  { %v1027_v48 = vadd.f32 %v2463_v23, %v961_v56  ;;  %v1018_v34 = vpop.f32.mrb[17].mxu0 }
 0x3f1   :  { %v1019_v12 = vadd.f32 %v1018_v34, %v951_v39  ;;  %v2464_v4 = vpop.f32.mrb[18].mxu0  ;;  %v2309_v39 = vld [vmem:[%s3434_s6 + $0x28] sm:$0xff] }
 0x3f2   :  { %vm1035_vm6 = vcmp.ge.f32.partialorder %v1027_v48, 0.0  ;;  %v1039_v59 = vmul.f32 0.01, %v1027_v48  ;;  %v1030_v33 = vadd.f32 %v2464_v4, %v966_v62  ;;  %v1021_v46 = vpop.f32.mrb[19].mxu0  ;;  %1826 = vperm.xlu0 %2576, %v2309_v39   ;;  %v2320_v4 = vld [vmem:[%s3436_s8 + $0x20] sm:$0xff] }
 0x3f3   :  { %vm1033_vm7 = vcmp.ge.f32.partialorder %v1019_v12, 0.0  ;;  %v1037_v37 = vmul.f32 0.01, %v1019_v12  ;;  %v1022_v20 = vadd.f32 %v1021_v46, %v956_v3 }
 0x3f4   :  { %vm1036_vm8 = vcmp.ge.f32.partialorder %v1030_v33, 0.0  ;;  %v1040_v29 = vmul.f32 0.01, %v1030_v33  ;;  %v1043_v0 = vsel %vm1035_vm6, %v1027_v48, %v1039_v59 }
 0x3f5   :  { %v1041_v11 = vsel %vm1033_vm7, %v1019_v12, %v1037_v37  ;;  %vm1034_vm9 = vcmp.ge.f32.partialorder %v1022_v20, 0.0  ;;  %v1038_v21 = vmul.f32 0.01, %v1022_v20  ;;  %v1537_v60 = vmax.f32 %v1043_v0, 0.0 }
 0x3f6   :  { %v1535_v27 = vmax.f32 %v1041_v11, 0.0  ;;  %v1044_v35 = vsel %vm1036_vm8, %v1030_v33, %v1040_v29  ;;  %1930 = vperm.xlu0 %2576, %v2320_v4  }
 0x3f7   :  { %v1042_v36 = vsel %vm1034_vm9, %v1022_v20, %v1038_v21  ;;  %v1051_v8 = vpack.c.bf16 %v1044_v35, %v1043_v0  ;;  %v1538_v41 = vmax.f32 %v1044_v35, 0.0  ;;  %v1561_v51 = vmul.f32 %v1552_v25, %v1537_v60  ;;  %v3209_v0 = vpop.permute.xlu0 %1589 }
 0x3f8   :  { %v1559_v9 = vmul.f32 %v1542_v13, %v1535_v27  ;;  %v1050_v28 = vpack.c.bf16 %v1042_v36, %v1041_v11  ;;  %v1536_v50 = vmax.f32 %v1042_v36, 0.0  ;;  %v2322_v13 = vld [vmem:[%s3436_s8 + $0x30] sm:$0xff] }
 0x3f9   :  { %v1562_v53 = vmul.f32 %v1557_v55, %v1538_v41  ;;  %v1566_v63 = vsel %vm160_vm2, %v1561_v51, 0.0 }
 0x3fa   :  { %v1560_v44 = vmul.f32 %v1547_v57, %v1536_v50  ;;  %2465 = vmatprep.subr.bf16.mxu1 %v1050_v28  ;;  %2483 = vmatprep.mubr.msk.bf16.mxu0 %vm160_vm2, %v1050_v28  ;;  %v1563_v19 = vsel %vm160_vm2, %v1559_v9, 0.0 }
 0x3fb   :  { %2466 = vmatpush3.bf16.msra.mxu1 %v1050_v28  ;;  %2484 = vmatmul.mubr.msk.bf16.vlgmr.msra.gmra.mrb[20].mxu0 %vm160_vm2, %v1051_v8  ;;  %v1568_v7 = vsel %vm160_vm2, %v1562_v53, 0.0 }
 0x3fc   :  { %v1564_v24 = vsel %vm160_vm2, %v1560_v44, 0.0  ;;  %2467 = vmatprep.subr.bf16.mxu1 %v1051_v8  ;;  %2489 = vmatprep.mubr.msk.bf16.mxu0 %vm160_vm2, %v1050_v28 }
 0x3fd   :  { %v1565_v10 = vadd.f32 %v1564_v24, %v1563_v19  ;;  %2488 = vmatpush3.bf16.msra.mxu0 %v2629_v6  ;;  %1940 = vperm.xlu0 %2576, %v2322_v13   ;;  %v2144_v13 = vld [vmem:[%s3440_s12] sm:$0xf] }
 0x3fe   :  { %2499 = vmatprep.subr.bf16.mxu0 %v2790_v18  ;;  %v2630_v18 = vld [vmem:[%s3429_s1 + $0x18] sm:$0xff]  }
 0x3ff   :  { %v1567_v17 = vadd.f32 %v1566_v63, %v1565_v10  ;;  %2468 = vmatpush3.bf16.msra.mxu1 %v1051_v8 }
 0x400   :  { %2473 = vmatprep.subr.bf16.mxu1 %v2817_v45 }
 0x401   :  { %v3146_v26 = vadd.f32 %v1568_v7, %v1567_v17  ;;  %v2101_v17 = vld [vmem:[%s3438_s10] sm:$0xff]  ;;  %v3244_v7 = vpop.permute.xlu0 %1593 }
 0x402   :  { %2470 = vmatmul.mubr.msk.bf16.vlgmr.msra.gmra.mrb[16].mxu1 %vm870_vm3, %v2590_v31  ;;  %2107 = vperm.xlu0 %2576, %v2101_v17  }
 0x403   :  { %2474 = vmatpush3.bf16.msra.mxu1 %v2817_v45  ;;  %2490 = vmatmul.mubr.msk.bf16.vlgmr.msra.gmra.mrb[24].mxu0 %vm160_vm2, %v1051_v8  ;;  %v2631_v45 = vld [vmem:[%s3429_s1 + $0x10] sm:$0xff]   ;;  %s2632_s1 = scalar_lea.vmem %s2229_s18, 64 }
 0x404   :  { %2475 = vmatprep.subr.bf16.mxu1 %v2815_v43  ;;  %2501 = vmatprep.mubr.msk.bf16.mxu0 %vm160_vm2, %v1050_v28  ;;  %p2633_p0 = scmp.ne.s32.totalorder %s2229_s18, %s2632_s1  ;;  %p2638_p2 = scmp.lt.s32.totalorder %s2632_s1, %s2632_s1 }
 0x405   :  { %2500 = vmatpush3.bf16.msra.mxu0 %v2630_v18  ;;  %2477 = vmatprep.mubr.msk.bf16.mxu1 %vm870_vm3, %v2591_v32 }
 0x406   :  { %2511 = vmatprep.subr.bf16.mxu0 %v2831_v52  ;;  %p2639_p3 = por %p2638_p2, %p2637_p1 }
 0x407   :  { %2476 = vmatpush3.bf16.msra.mxu1 %v2815_v43  ;;  %v3476_v43 = vld [vmem:[#allocation5_spill] sm:$0xff] }
 0x408   :  { %2493 = vmatprep.subr.bf16.mxu1 %v2631_v45  ;;  %p2640_p4 = pnand %p2639_p3, %p2633_p0 }
 0x40b   :  { %2502 = vmatmul.mubr.msk.bf16.vlgmr.msra.gmra.mrb[28].mxu0 %vm160_vm2, %v1051_v8 }
 0x40c   :  { %2513 = vmatprep.mubr.msk.bf16.mxu0 %vm160_vm2, %v1050_v28  ;;  %2512 = vmatpush3.bf16.msra.mxu0 %v2831_v52 }
 0x40e   :  { %2478 = vmatmul.mubr.msk.bf16.vlgmr.msra.gmra.mrb[16].mxu1 %vm870_vm3, %v2592_v49 }
 0x40f   :  { %2494 = vmatpush3.bf16.msra.mxu1 %v2631_v45  ;;  %2495 = vmatprep.mubr.msk.bf16.mxu1 %vm160_vm2, %v1050_v28 }
 0x410   :  { %2505 = vmatprep.subr.bf16.mxu1 %v3476_v43 }
 0x413   :  { %2514 = vmatmul.mubr.msk.bf16.vlgmr.msra.gmra.mrb[32].mxu0 %vm160_vm2, %v1051_v8 }
 0x416   :  { %2496 = vmatmul.mubr.msk.bf16.vlgmr.msra.gmra.mrb[20].mxu1 %vm160_vm2, %v1051_v8 }
 0x417   :  { %2506 = vmatpush3.bf16.msra.mxu1 %v3476_v43  ;;  %2507 = vmatprep.mubr.msk.bf16.mxu1 %vm160_vm2, %v1050_v28 }
 0x41e   :  { %2508 = vmatmul.mubr.msk.bf16.vlgmr.msra.gmra.mrb[24].mxu1 %vm160_vm2, %v1051_v8 }
 0x41f   :  { %2521 = vmatprep.mubr.msk.bf16.mxu1 %vm870_vm3, %v2593_v5 }
 0x4ce   :  { %v2485_v61 = vpop.f32.mrb[20].mxu0 }
 0x4cf   :  { %v1222_v22 = vpop.f32.mrb[21].mxu0  ;;  %v1488_v14 = vmul.f32 0.01, %v2485_v61  ;;  %vm1484_vm12 = vcmp.ge.f32.partialorder %v2485_v61, 0.0 }
 0x4d0   :  { %v2486_v52 = vpop.f32.mrb[22].mxu0  ;;  %v1486_v54 = vmul.f32 0.01, %v1222_v22  ;;  %vm1482_vm11 = vcmp.ge.f32.partialorder %v1222_v22, 0.0 }
 0x4d1   :  { %v1225_v40 = vpop.f32.mrb[23].mxu0  ;;  %v3193_v56 = vsel %vm1484_vm12, %v2485_v61, %v1488_v14  ;;  %v1489_v34 = vmul.f32 0.01, %v2486_v52  ;;  %vm1485_vm0 = vcmp.ge.f32.partialorder %v2486_v52, 0.0 }
 0x4d2   :  { %vm1483_vm10 = vcmp.ge.f32.partialorder %v1225_v40, 0.0  ;;  %v1487_v30 = vmul.f32 0.01, %v1225_v40  ;;  %v3184_v15 = vsel %vm1482_vm11, %v1222_v22, %v1486_v54  ;;  %v1578_v37 = vmax.f32 %v3193_v56, 0.0 }
 0x4d3   :  { %v1576_v23 = vmax.f32 %v3184_v15, 0.0  ;;  %v3214_v27 = vsel %vm1485_vm0, %v2486_v52, %v1489_v34 }
 0x4d4   :  { %v3179_v2 = vsel %vm1483_vm10, %v1225_v40, %v1487_v30  ;;  %v1598_v41 = vmul.f32 %v3209_v0, %v1578_v37  ;;  %v1579_v6 = vmax.f32 %v3214_v27, 0.0 }
 0x4d5   :  { %v1577_v16 = vmax.f32 %v3179_v2, 0.0  ;;  %v1596_v29 = vmul.f32 %v3187_v42, %v1576_v23 }
 0x4d6   :  { %v2491_v38 = vpop.f32.mrb[24].mxu0  ;;  %v1603_v22 = vsel %vm160_vm2, %v1598_v41, 0.0  ;;  %v1599_v14 = vmul.f32 %v3244_v7, %v1579_v6 }
 0x4d7   :  { %v1271_v47 = vpop.f32.mrb[25].mxu0  ;;  %v1500_v58 = vmul.f32 0.01, %v2491_v38  ;;  %vm1496_vm14 = vcmp.ge.f32.partialorder %v2491_v38, 0.0  ;;  %v1597_v59 = vmul.f32 %v3129_v1, %v1577_v16  ;;  %v1600_v19 = vsel %vm160_vm2, %v1596_v29, 0.0  ;;  %v2103_v16 = vld [vmem:[%s3438_s10 + $0x10] sm:$0xff] }
 0x4d8   :  { %vm1494_vm13 = vcmp.ge.f32.partialorder %v1271_v47, 0.0  ;;  %v1498_v3 = vmul.f32 0.01, %v1271_v47  ;;  %v2492_v62 = vpop.f32.mrb[26].mxu0  ;;  %2117 = vperm.xlu0 %2576, %v2103_v16  }
 0x4d9   :  { %v1274_v57 = vpop.f32.mrb[27].mxu0  ;;  %v3202_v33 = vsel %vm1496_vm14, %v2491_v38, %v1500_v58  ;;  %v1501_v20 = vmul.f32 0.01, %v2492_v62  ;;  %vm1497_vm1 = vcmp.ge.f32.partialorder %v2492_v62, 0.0  ;;  %v1601_v36 = vsel %vm160_vm2, %v1597_v59, 0.0 }
 0x4da   :  { %v3196_v48 = vsel %vm1494_vm13, %v1271_v47, %v1498_v3  ;;  %vm1495_vm15 = vcmp.ge.f32.partialorder %v1274_v57, 0.0  ;;  %v1499_v12 = vmul.f32 0.01, %v1274_v57  ;;  %v1616_v60 = vmax.f32 %v3202_v33, 0.0 }
 0x4db   :  { %v1614_v46 = vmax.f32 %v3196_v48, 0.0  ;;  %v3229_v55 = vsel %vm1497_vm1, %v2492_v62, %v1501_v20  ;;  %v1602_v63 = vadd.f32 %v1601_v36, %v1600_v19  ;;  %v1605_v20 = vsel %vm160_vm2, %v1599_v14, 0.0 }
 0x4dc   :  { %v3206_v25 = vsel %vm1495_vm15, %v1274_v57, %v1499_v12  ;;  %v1620_v31 = vmul.f32 %v1616_v60, %v3209_v0  ;;  %v1617_v18 = vmax.f32 %v3229_v55, 0.0  ;;  %2147 = vperm.xlu0 %2576, %v2144_v13   ;;  %vm2659_vm15 = vmmov 0  }
 0x4dd   :  { %v1615_v11 = vmax.f32 %v3206_v25, 0.0  ;;  %v1618_v8 = vmul.f32 %v1614_v46, %v3187_v42  ;;  %v1604_v54 = vadd.f32 %v1603_v22, %v1602_v63 }
 0x4de   :  { %v3212_v21 = vpop.f32.mrb[28].mxu0  ;;  %v1625_v38 = vsel %vm160_vm2, %v1620_v31, 0.0  ;;  %v1621_v47 = vmul.f32 %v1617_v18, %v3244_v7 }
 0x4df   :  { %v3217_v35 = vpop.f32.mrb[29].mxu0  ;;  %v1619_v9 = vmul.f32 %v1615_v11, %v3129_v1  ;;  %v1520_v44 = vand.u32 2147483647, %v3212_v21  ;;  %v1622_v32 = vsel %vm160_vm2, %v1618_v8, 0.0  ;;  %v1606_v36 = vadd.f32 %v1605_v20, %v1604_v54 }
 0x4e0   :  { %v1518_v28 = vand.u32 2147483647, %v3217_v35  ;;  %v3226_v50 = vpop.f32.mrb[30].mxu0  ;;  %v1627_v8 = vsel %vm160_vm2, %v1621_v47, 0.0 }
 0x4e1   :  { %v3232_v51 = vpop.f32.mrb[31].mxu0  ;;  %v1623_v24 = vsel %vm160_vm2, %v1619_v9, 0.0  ;;  %v1660_v43 = vmax.f32 %v1520_v44, 0.0  ;;  %v1521_v61 = vand.u32 2147483647, %v3226_v50 }
 0x4e2   :  { %v1658_v53 = vmax.f32 %v1518_v28, 0.0  ;;  %v1519_v10 = vand.u32 2147483647, %v3232_v51  ;;  %v1624_v49 = vadd.f32 %v1623_v24, %v1622_v32 }
 0x4e3   :  { %v1664_v23 = vmul.f32 %v1660_v43, %v3209_v0  ;;  %v1661_v34 = vmax.f32 %v1521_v61, 0.0  ;;  %v1607_v43 = vrot.slane %v1606_v36, 4 }
 0x4e4   :  { %v1659_v45 = vmax.f32 %v1519_v10, 0.0  ;;  %v1662_v52 = vmul.f32 %v1658_v53, %v3187_v42  ;;  %v1626_v39 = vadd.f32 %v1625_v38, %v1624_v49  ;;  %v1570_v49 = vrot.slane %v3146_v26, 4 }
 0x4e5   :  { %v1669_v53 = vsel %vm160_vm2, %v1664_v23, 0.0  ;;  %v1665_v6 = vmul.f32 %v1661_v34, %v3244_v7 }
 0x4e6   :  { %v1663_v40 = vmul.f32 %v1659_v45, %v3129_v1  ;;  %v3256_v30 = vpop.f32.mrb[32].mxu0  ;;  %v1666_v59 = vsel %vm160_vm2, %v1662_v52, 0.0  ;;  %v1628_v24 = vadd.f32 %v1627_v8, %v1626_v39 }
 0x4e7   :  { %v3260_v5 = vpop.f32.mrb[33].mxu0  ;;  %v3458_v3 = vand.u32 2147483647, %v3256_v30  ;;  %v1671_v54 = vsel %vm160_vm2, %v1665_v6, 0.0 }
 0x4e8   :  { %v1667_v58 = vsel %vm160_vm2, %v1663_v40, 0.0  ;;  %v3461_v62 = vand.u32 2147483647, %v3260_v5  ;;  %v3269_v57 = vpop.f32.mrb[34].mxu0  ;;  %v1629_v40 = vrot.slane %v1628_v24, 4 }
 0x4e9   :  { %v2497_v12 = vpop.f32.mrb[20].mxu1  ;;  %v3274_v4 = vpop.f32.mrb[35].mxu0  ;;  %v1668_v29 = vadd.f32 %v1667_v58, %v1666_v59  ;;  %v3457_v11 = vand.u32 2147483647, %v3269_v57  ;;  %v1704_v9 = vmax.f32 %v3458_v3, 0.0 }
 0x4ea   :  { %v1702_v46 = vmax.f32 %v3461_v62, 0.0  ;;  %v1320_v37 = vpop.f32.mrb[21].mxu1  ;;  %v1527_v41 = vand.u32 2147483647, %v3274_v4  ;;  %v1512_v31 = vmul.f32 0.01, %v2497_v12 }
 0x4eb   :  { %v2498_v60 = vpop.f32.mrb[22].mxu1  ;;  %vm1506_vm4 = vcmp.ge.f32.partialorder %v1320_v37, 0.0  ;;  %v1670_v32 = vadd.f32 %v1669_v53, %v1668_v29  ;;  %v1705_v18 = vmax.f32 %v3457_v11, 0.0  ;;  %vm1508_vm5 = vcmp.ge.f32.partialorder %v2497_v12, 0.0 }
 0x4ec   :  { %v1323_v19 = vpop.f32.mrb[23].mxu1  ;;  %v1706_v63 = vmul.f32 %v1702_v46, %v3187_v42  ;;  %v1703_v17 = vmax.f32 %v1527_v41, 0.0  ;;  %v1510_v45 = vmul.f32 0.01, %v1320_v37  ;;  %v1708_v22 = vmul.f32 %v1704_v9, %v3209_v0 }
 0x4ed   :  { %v1513_v38 = vmul.f32 0.01, %v2498_v60  ;;  %v3304_v58 = vsel %vm1508_vm5, %v2497_v12, %v1512_v31  ;;  %vm1509_vm6 = vcmp.ge.f32.partialorder %v2498_v60, 0.0  ;;  %v1672_v34 = vadd.f32 %v1671_v54, %v1670_v32 }
 0x4ee   :  { %v1707_v52 = vmul.f32 %v1703_v17, %v3129_v1  ;;  %v3299_v14 = vsel %vm1506_vm4, %v1320_v37, %v1510_v45  ;;  %v1710_v47 = vsel %vm160_vm2, %v1706_v63, 0.0  ;;  %v1709_v59 = vmul.f32 %v1705_v18, %v3244_v7 }
 0x4ef   :  { %vm1507_vm7 = vcmp.ge.f32.partialorder %v1323_v19, 0.0  ;;  %v1713_v37 = vsel %vm160_vm2, %v1708_v22, 0.0  ;;  %v1636_v29 = vmax.f32 %v3299_v14, 0.0  ;;  %v1511_v13 = vmul.f32 0.01, %v1323_v19 }
 0x4f0   :  { %v1711_v39 = vsel %vm160_vm2, %v1707_v52, 0.0  ;;  %v3315_v9 = vsel %vm1509_vm6, %v2498_v60, %v1513_v38  ;;  %v1571_v63 = vadd.f32 %v1570_v49, %v3146_v26  ;;  %v1630_v31 = vadd.f32 %v1629_v40, %v1628_v24 }
 0x4f1   :  { %v3301_v16 = vpop.f32.mrb[24].mxu1  ;;  %v1712_v46 = vadd.f32 %v1711_v39, %v1710_v47  ;;  %v1638_v17 = vmax.f32 %v3304_v58, 0.0  ;;  %v3322_v32 = vsel %vm1507_vm7, %v1323_v19, %v1511_v13  ;;  %v1608_v18 = vadd.f32 %v1607_v43, %v1606_v36 }
 0x4f2   :  { %v3307_v23 = vpop.f32.mrb[25].mxu1  ;;  %v3460_v53 = vand.u32 2147483647, %v3301_v16  ;;  %v1673_v45 = vrot.slane %v1672_v34, 4  ;;  %v1715_v22 = vsel %vm160_vm2, %v1709_v59, 0.0  ;;  %v1640_v60 = vmul.f32 %v1636_v29, %v3187_v42 }
 0x4f3   :  { %v3310_v20 = vpop.f32.mrb[26].mxu1  ;;  %v1522_v12 = vand.u32 2147483647, %v3307_v23  ;;  %v1714_v8 = vadd.f32 %v1713_v37, %v1712_v46  ;;  %v1639_v54 = vmax.f32 %v3315_v9, 0.0  ;;  %v1637_v38 = vmax.f32 %v3322_v32, 0.0 }
 0x4f4   :  { %v3318_v6 = vpop.f32.mrb[27].mxu1  ;;  %v3459_v26 = vand.u32 2147483647, %v3310_v20  ;;  %v1682_v19 = vmax.f32 %v3460_v53, 0.0  ;;  %v1572_v49 = vrot.slane %v1571_v63, 2  ;;  %v1631_v43 = vrot.slane %v1630_v31, 2 }
 0x4f5   :  { %v1680_v52 = vmax.f32 %v1522_v12, 0.0  ;;  %v1716_v24 = vadd.f32 %v1715_v22, %v1714_v8  ;;  %v1523_v36 = vand.u32 2147483647, %v3318_v6  ;;  %v1642_v40 = vmul.f32 %v1638_v17, %v3209_v0 }
 0x4f6   :  { %v1641_v47 = vmul.f32 %v1637_v38, %v3129_v1  ;;  %v1609_v39 = vrot.slane %v1608_v18, 2  ;;  %v1683_v46 = vmax.f32 %v3459_v26, 0.0  ;;  %v1674_v29 = vadd.f32 %v1673_v45, %v1672_v34 }
 0x4f7   :  { %v1684_v59 = vmul.f32 %v1680_v52, %v3187_v42  ;;  %v1681_v37 = vmax.f32 %v1523_v36, 0.0  ;;  %v1644_v13 = vsel %vm160_vm2, %v1640_v60, 0.0  ;;  %v1643_v8 = vmul.f32 %v1639_v54, %v3244_v7 }
 0x4f8   :  { %v1645_v22 = vsel %vm160_vm2, %v1641_v47, 0.0  ;;  %v1717_v11 = vrot.slane %v1716_v24, 4  ;;  %v1686_v38 = vmul.f32 %v1682_v19, %v3209_v0  ;;  %v1632_v42 = vadd.f32 %v1631_v43, %v1630_v31 }
 0x4f9   :  { %v1646_v17 = vadd.f32 %v1645_v22, %v1644_v13  ;;  %v1685_v3 = vmul.f32 %v1681_v37, %v3129_v1  ;;  %v1647_v52 = vsel %vm160_vm2, %v1642_v40, 0.0  ;;  %v1688_v53 = vsel %vm160_vm2, %v1684_v59, 0.0 }
 0x4fa   :  { %v1687_v34 = vmul.f32 %v1683_v46, %v3244_v7  ;;  %v1573_v60 = vadd.f32 %v1572_v49, %v1571_v63  ;;  %v1610_v54 = vadd.f32 %v1609_v39, %v1608_v18  ;;  %v1649_v47 = vsel %vm160_vm2, %v1643_v8, 0.0 }
 0x4fb   :  { %v1648_v26 = vadd.f32 %v1647_v52, %v1646_v17  ;;  %v1689_v45 = vsel %vm160_vm2, %v1685_v3, 0.0  ;;  %v1675_v13 = vrot.slane %v1674_v29, 2  ;;  %v1718_v22 = vadd.f32 %v1717_v11, %v1716_v24 }
 0x4fc   :  { %v1690_v62 = vadd.f32 %v1689_v45, %v1688_v53  ;;  %v1691_v1 = vsel %vm160_vm2, %v1686_v38, 0.0  ;;  %v1633_v19 = vrot.slane %v1632_v42, 1  ;;  %v1693_v40 = vsel %vm160_vm2, %v1687_v34, 0.0 }
 0x4fd   :  { %v1650_v0 = vadd.f32 %v1649_v47, %v1648_v26  ;;  %v1574_v59 = vrot.slane %v1573_v60, 1  ;;  %v1611_v7 = vrot.slane %v1610_v54, 1  ;;  %v1676_v46 = vadd.f32 %v1675_v13, %v1674_v29 }
 0x4fe   :  { %v1692_v31 = vadd.f32 %v1691_v1, %v1690_v62  ;;  %v1719_v3 = vrot.slane %v1718_v22, 2  ;;  %v1634_v49 = vadd.f32 %v1633_v19, %v1632_v42  ;;  %vm2193_vm6 = vcmask 125952  }
 0x4ff   :  { %v1651_v43 = vrot.slane %v1650_v0, 4  ;;  %v1575_v53 = vadd.f32 %v1574_v59, %v1573_v60  ;;  %v1612_v11 = vadd.f32 %v1611_v7, %v1610_v54  ;;  %v1677_v26 = vrot.slane %v1676_v46, 1 }
 0x500   :  { %v1694_v37 = vadd.f32 %v1693_v40, %v1692_v31  ;;  %v1720_v24 = vadd.f32 %v1719_v3, %v1718_v22 }
 0x501   :  { %v1652_v63 = vadd.f32 %v1651_v43, %v1650_v0  ;;  %v1635_v38 = vadd.f32 %v1634_v49, %v1575_v53  ;;  %v1613_v34 = vadd.f32 %v1612_v11, %v1575_v53  ;;  %v1678_v47 = vadd.f32 %v1677_v26, %v1676_v46 }
 0x502   :  { %v1695_v18 = vrot.slane %v1694_v37, 4  ;;  %v1721_v1 = vrot.slane %v1720_v24, 1 }
 0x503   :  { %v1653_v39 = vrot.slane %v1652_v63, 2  ;;  %v1724_v13 = vmax.f32 %v1613_v34, %v1635_v38  ;;  %v1679_v42 = vadd.f32 %v1678_v47, %v1575_v53 }
 0x504   :  { %v1696_v8 = vadd.f32 %v1695_v18, %v1694_v37  ;;  %v1722_v19 = vadd.f32 %v1721_v1, %v1720_v24 }
 0x505   :  { %v1654_v17 = vadd.f32 %v1653_v39, %v1652_v63 }
 0x506   :  { %v1697_v62 = vrot.slane %v1696_v8, 2  ;;  %v1723_v59 = vadd.f32 %v1722_v19, %v1575_v53 }
 0x507   :  { %v1655_v52 = vrot.slane %v1654_v17, 1 }
 0x508   :  { %v1698_v45 = vadd.f32 %v1697_v62, %v1696_v8 }
 0x509   :  { %v1656_v31 = vadd.f32 %v1655_v52, %v1654_v17 }
 0x50a   :  { %v1699_v29 = vrot.slane %v1698_v45, 1 }
 0x50b   :  { %v1657_v0 = vadd.f32 %v1656_v31, %v1575_v53 }
 0x50c   :  { %v1700_v43 = vadd.f32 %v1699_v29, %v1698_v45 }
 0x50d   :  { %v1725_v60 = vmax.f32 %v1724_v13, %v1657_v0 }
 0x50e   :  { %v1701_v40 = vadd.f32 %v1700_v43, %v1575_v53 }
 0x50f   :  { %v1726_v54 = vmax.f32 %v1725_v60, %v1679_v42 }
 0x511   :  { %v1727_v22 = vmax.f32 %v1726_v54, %v1701_v40 }
 0x513   :  { %v1728_v37 = vmax.f32 %v1727_v22, %v1723_v59 }
 0x515   :  { %v1729_v7 = vsub.f32 %v1613_v34, %v1728_v37  ;;  %v1732_v3 = vsub.f32 %v1635_v38, %v1728_v37  ;;  %v1735_v63 = vsub.f32 %v1657_v0, %v1728_v37  ;;  %v1738_v18 = vsub.f32 %v1679_v42, %v1728_v37 }
 0x516   :  { %v1741_v8 = vsub.f32 %v1701_v40, %v1728_v37  ;;  %v1744_v26 = vsub.f32 %v1723_v59, %v1728_v37 }
 0x517   :  { %v1730_v49 = vmul.f32 1.442695, %v1729_v7  ;;  %v1733_v46 = vmul.f32 1.442695, %v1732_v3  ;;  %v1736_v39 = vmul.f32 1.442695, %v1735_v63 }
 0x518   :  { %v1739_v11 = vmul.f32 1.442695, %v1738_v18  ;;  %v1742_v24 = vmul.f32 1.442695, %v1741_v8  ;;  %v1745_v17 = vmul.f32 1.442695, %v1744_v26 }
 0x519   :  { %2613 = vpow2.f32 %v1730_v49 }
 0x51a   :  { %2615 = vpow2.f32 %v1733_v46 }
 0x51b   :  { %2617 = vpow2.f32 %v1736_v39 }
 0x51c   :  { %2619 = vpow2.f32 %v1739_v11 }
 0x51d   :  { %2621 = vpow2.f32 %v1742_v24 }
 0x51e   :  { %2623 = vpow2.f32 %v1745_v17  ;;  %v3477_v17 = vand.u32 2147483647, %v3260_v5 }
 0x523   :  { %v2614_v53 = vpop.eup %2613 }
 0x524   :  { %v2616_v62 = vpop.eup %2615 }
 0x525   :  { %v1747_v52 = vadd.f32 %v2616_v62, %v2614_v53  ;;  %v2618_v38 = vpop.eup %2617 }
 0x526   :  { %v2620_v34 = vpop.eup %2619 }
 0x527   :  { %v1748_v45 = vadd.f32 %v2618_v38, %v1747_v52  ;;  %v2622_v1 = vpop.eup %2621  ;;  %v3480_v52 = vand.u32 2147483647, %v3256_v30  ;;  %v2594_v30 = vld [vmem:[%s3433_s5 + $0x18] sm:$0xff]  }
 0x528   :  { %v2624_v29 = vpop.eup %2623 }
 0x529   :  { %v1749_v47 = vadd.f32 %v2620_v34, %v1748_v45 }
 0x52b   :  { %v1750_v31 = vadd.f32 %v2622_v1, %v1749_v47 }
 0x52d   :  { %v1751_v13 = vadd.f32 %v2624_v29, %v1750_v31 }
 0x52f   :  { %2625 = vrcp.f32 %v1751_v13 }
 0x539   :  { %v2626_v0 = vpop.eup %2625 }
 0x53a   :  { %v1753_v43 = vmul.f32 %v2626_v0, %v2614_v53  ;;  %v1758_v42 = vmul.f32 %v2626_v0, %v2616_v62  ;;  %v1767_v19 = vmul.f32 %v2626_v0, %v2618_v38  ;;  %v1776_v54 = vmul.f32 %v2626_v0, %v2620_v34 }
 0x53b   :  { %v1785_v59 = vmul.f32 %v2626_v0, %v2622_v1  ;;  %v1794_v63 = vmul.f32 %v2626_v0, %v2624_v29  ;;  %v3478_v53 = vand.u32 2147483647, %v3301_v16  ;;  %v3481_v34 = vand.u32 2147483647, %v3269_v57  ;;  %v2595_v57 = vld [vmem:[%s3435_s7 + $0x10] sm:$0xff]   ;;  %v1822_v0 = vpop.permute.xlu1 %1821 }
 0x53c   :  { %v1755_v60 = vmul.f32 %v1753_v43, %v3179_v2  ;;  %v1760_v40 = vmul.f32 %v1758_v42, %v3206_v25  ;;  %v1754_v22 = vmul.f32 %v1753_v43, %v3184_v15  ;;  %v1759_v37 = vmul.f32 %v1758_v42, %v3196_v48  ;;  %2529 = vmatprep.mubr.msk.bf16.mxu0 %vm870_vm3, %v2595_v57 }
 0x53d   :  { %v1769_v3 = vmul.f32 %v1767_v19, %v3322_v32  ;;  %v1768_v49 = vmul.f32 %v1767_v19, %v3299_v14  ;;  %v1756_v46 = vmul.f32 %v1753_v43, %v3193_v56  ;;  %v1757_v39 = vmul.f32 %v1753_v43, %v3214_v27 }
 0x53e   :  { %v1764_v7 = vadd.f32 %v1760_v40, %v1755_v60  ;;  %v1763_v18 = vadd.f32 %v1759_v37, %v1754_v22  ;;  %v1778_v25 = vmul.f32 %v1776_v54, %v1519_v10  ;;  %v1761_v8 = vmul.f32 %v1758_v42, %v3202_v33  ;;  %v1827_v22 = vpop.permute.xlu0 %1826 }
 0x53f   :  { %v1762_v15 = vmul.f32 %v1758_v42, %v3229_v55  ;;  %v1787_v48 = vmul.f32 %v1785_v59, %v1523_v36  ;;  %v1777_v11 = vmul.f32 %v1776_v54, %v1518_v28  ;;  %v1770_v14 = vmul.f32 %v1767_v19, %v3304_v58  ;;  %v1832_v43 = vpop.permute.xlu1 %1831 }
 0x540   :  { %v1773_v2 = vadd.f32 %v1769_v3, %v1764_v7  ;;  %v1772_v32 = vadd.f32 %v1768_v49, %v1763_v18  ;;  %v1765_v26 = vadd.f32 %v1761_v8, %v1756_v46  ;;  %v1771_v24 = vmul.f32 %v1767_v19, %v3315_v9 }
 0x541   :  { %v1766_v27 = vadd.f32 %v1762_v15, %v1757_v39  ;;  %v1786_v33 = vmul.f32 %v1785_v59, %v1522_v12  ;;  %v1796_v55 = vmul.f32 %v1794_v63, %v1527_v41  ;;  %v1779_v10 = vmul.f32 %v1776_v54, %v1520_v44 }
 0x542   :  { %v1782_v56 = vadd.f32 %v1778_v25, %v1773_v2  ;;  %v1781_v51 = vadd.f32 %v1777_v11, %v1772_v32  ;;  %v1774_v35 = vadd.f32 %v1770_v14, %v1765_v26  ;;  %v1780_v58 = vmul.f32 %v1776_v54, %v1521_v61  ;;  %v2596_v32 = vld [vmem:[%s3435_s7 + $0x18] sm:$0xff]   ;;  %v2597_v11 = vld [vmem:[%s3437_s9 + $0x20] sm:$0xff]   ;;  %v1931_v14 = vpop.permute.xlu0 %1930 }
 0x543   :  { %v1775_v28 = vadd.f32 %v1771_v24, %v1766_v27  ;;  %v1795_v9 = vmul.f32 %v1794_v63, %v3477_v17  ;;  %v1788_v23 = vmul.f32 %v1785_v59, %v3478_v53  ;;  %v3479_v41 = vand.u32 2147483647, %v3310_v20  ;;  %v1837_v40 = vpop.permute.xlu1 %1836 }
 0x544   :  { %v1791_v6 = vadd.f32 %v1787_v48, %v1782_v56  ;;  %v1790_v36 = vadd.f32 %v1786_v33, %v1781_v51  ;;  %v1783_v62 = vadd.f32 %v1779_v10, %v1774_v35  ;;  %v1797_v38 = vmul.f32 %v1794_v63, %v3480_v52 }
 0x545   :  { %v1784_v4 = vadd.f32 %v1780_v58, %v1775_v28  ;;  %v1789_v21 = vmul.f32 %v1785_v59, %v3479_v41  ;;  %v1798_v5 = vmul.f32 %v1794_v63, %v3481_v34 }
 0x546   :  { %v1800_v12 = vadd.f32 %v1796_v55, %v1791_v6  ;;  %v1799_v44 = vadd.f32 %v1795_v9, %v1790_v36  ;;  %v1792_v50 = vadd.f32 %v1788_v23, %v1783_v62  ;;  %v1941_v26 = vpop.permute.xlu0 %1940 }
 0x547   :  { %v1793_v61 = vadd.f32 %v1789_v21, %v1784_v4  ;;  %v1936_v56 = vpop.permute.xlu1 %1935  ;;  %v2598_v21 = vld [vmem:[%s3437_s9 + $0x28] sm:$0xff]  }
 0x548   :  { %v1804_v45 = vmul.f32 0.16666667, %v1800_v12  ;;  %v1803_v47 = vmul.f32 0.16666667, %v1799_v44  ;;  %v1801_v1 = vadd.f32 %v1797_v38, %v1792_v50  ;;  %v2658_v44 = vmov 0.0  }
 0x549   :  { %v1802_v16 = vadd.f32 %v1798_v5, %v1793_v61 }
 0x54a   :  { %v1812_v31 = vpack.c.bf16 %v1804_v45, %v1803_v47  ;;  %v1805_v29 = vmul.f32 0.16666667, %v1801_v1  ;;  %v2108_v52 = vpop.permute.xlu0 %2107 }
 0x54b   :  { %v1806_v13 = vmul.f32 0.16666667, %v1802_v16  ;;  %v1946_v33 = vpop.permute.xlu1 %1945 }
 0x54c   :  { %2517 = vmatprep.subr.bf16.mxu1 %v1812_v31 }
 0x54d   :  { %2518 = vmatpush3.bf16.msra.mxu1 %v1812_v31  ;;  %v1813_v20 = vpack.c.bf16 %v1806_v13, %v1805_v29 }
 0x54f   :  { %2519 = vmatprep.subr.bf16.mxu1 %v1813_v20  ;;  %v2113_v38 = vpop.permute.xlu1 %2112 }
 0x551   :  { %2520 = vmatpush3.bf16.msra.mxu1 %v1813_v20 }
 0x553   :  { %v2123_v5 = vpop.permute.xlu1 %2122 }
 0x554   :  { %2522 = vmatmul.mubr.msk.bf16.vlgmr.msra.gmra.mrb[28].mxu1 %vm870_vm3, %v2594_v30 }
 0x555   :  { %2537 = vmatprep.mubr.msk.bf16.mxu1 %vm870_vm3, %v2597_v11 }
 0x557   :  { %v2118_v45 = vpop.permute.xlu0 %2117 }
 0x627   :  { %v2523_v42 = vpop.f32.mrb[28].mxu1 }
 0x628   :  { %v1898_v19 = vadd.f32 %v2523_v42, %v1832_v43  ;;  %v1889_v60 = vpop.f32.mrb[29].mxu1 }
 0x629   :  { %v1890_v54 = vadd.f32 %v1889_v60, %v1822_v0  ;;  %v2524_v59 = vpop.f32.mrb[30].mxu1 }
 0x62a   :  { %v1910_v37 = vmul.f32 0.01, %v1898_v19  ;;  %v1901_v7 = vadd.f32 %v2524_v59, %v1837_v40  ;;  %v1892_v3 = vpop.f32.mrb[31].mxu1  ;;  %vm1906_vm2 = vcmp.ge.f32.partialorder %v1898_v19, 0.0  ;;  %v2148_v59 = vpop.permute.xlu0 %2147 }
 0x62b   :  { %v1908_v63 = vmul.f32 0.01, %v1890_v54  ;;  %v1893_v18 = vadd.f32 %v1892_v3, %v1827_v22  ;;  %vm1904_vm8 = vcmp.ge.f32.partialorder %v1890_v54, 0.0 }
 0x62c   :  { %vm1907_vm9 = vcmp.ge.f32.partialorder %v1901_v7, 0.0  ;;  %v1911_v49 = vmul.f32 0.01, %v1901_v7  ;;  %v1914_v39 = vsel %vm1906_vm2, %v1898_v19, %v1910_v37 }
 0x62d   :  { %vm1905_vm10 = vcmp.ge.f32.partialorder %v1893_v18, 0.0  ;;  %v1909_v46 = vmul.f32 0.01, %v1893_v18  ;;  %v1912_v25 = vsel %vm1904_vm8, %v1890_v54, %v1908_v63  ;;  %v2141_v54 = vld [vmem:[%s3439_s11] sm:$0x3] }
 0x62e   :  { %v1915_v2 = vsel %vm1907_vm9, %v1901_v7, %v1911_v49 }
 0x62f   :  { %v1913_v8 = vsel %vm1905_vm10, %v1893_v18, %v1909_v46  ;;  %v1922_v15 = vpack.c.bf16 %v1915_v2, %v1914_v39 }
 0x630   :  { %v1921_v48 = vpack.c.bf16 %v1913_v8, %v1912_v25 }
 0x632   :  { %2525 = vmatprep.subr.bf16.mxu0 %v1921_v48 }
 0x633   :  { %2526 = vmatpush3.bf16.msra.mxu0 %v1921_v48 }
 0x634   :  { %2527 = vmatprep.subr.bf16.mxu0 %v1922_v15 }
 0x637   :  { %2528 = vmatpush3.bf16.msra.mxu0 %v1922_v15 }
 0x638   :  { %2541 = vmatprep.subr.bf16.mxu0 %v2658_v44 }
 0x63a   :  { %2530 = vmatmul.mubr.msk.bf16.vlgmr.msra.gmra.mrb[36].mxu0 %vm870_vm3, %v2596_v32 }
 0x63b   :  { %2545 = vmatprep.mubr.msk.bf16.mxu0 %vm2659_vm15, %v2658_v44 }
 0x70d   :  { %v2531_v27 = vpop.f32.mrb[36].mxu0 }
 0x70e   :  { %v2007_v24 = vadd.f32 %v2531_v27, %v1941_v26  ;;  %v1998_v51 = vpop.f32.mrb[37].mxu0 }
 0x70f   :  { %v1999_v55 = vadd.f32 %v1998_v51, %v1931_v14  ;;  %v2532_v10 = vpop.f32.mrb[38].mxu0 }
 0x710   :  { %v2019_v6 = vmul.f32 0.01, %v2007_v24  ;;  %v2010_v35 = vadd.f32 %v2532_v10, %v1946_v33  ;;  %v2001_v28 = vpop.f32.mrb[39].mxu0  ;;  %vm2015_vm11 = vcmp.ge.f32.partialorder %v2007_v24, 0.0 }
 0x711   :  { %v2017_v58 = vmul.f32 0.01, %v1999_v55  ;;  %v2002_v36 = vadd.f32 %v2001_v28, %v1936_v56  ;;  %vm2013_vm12 = vcmp.ge.f32.partialorder %v1999_v55, 0.0 }
 0x712   :  { %vm2016_vm13 = vcmp.ge.f32.partialorder %v2010_v35, 0.0  ;;  %v2020_v17 = vmul.f32 0.01, %v2010_v35  ;;  %v2023_v53 = vsel %vm2015_vm11, %v2007_v24, %v2019_v6 }
 0x713   :  { %vm2014_vm14 = vcmp.ge.f32.partialorder %v2002_v36, 0.0  ;;  %v2018_v9 = vmul.f32 0.01, %v2002_v36  ;;  %v2021_v12 = vsel %vm2013_vm12, %v1999_v55, %v2017_v58 }
 0x714   :  { %v2024_v23 = vsel %vm2016_vm13, %v2010_v35, %v2020_v17 }
 0x715   :  { %v2022_v62 = vsel %vm2014_vm14, %v2002_v36, %v2018_v9  ;;  %v2031_v4 = vpack.c.bf16 %v2024_v23, %v2023_v53 }
 0x716   :  { %v2030_v41 = vpack.c.bf16 %v2022_v62, %v2021_v12 }
 0x718   :  { %2533 = vmatprep.subr.bf16.mxu1 %v2030_v41 }
 0x719   :  { %2534 = vmatpush3.bf16.msra.mxu1 %v2030_v41 }
 0x71a   :  { %2535 = vmatprep.subr.bf16.mxu1 %v2031_v4 }
 0x71d   :  { %2536 = vmatpush3.bf16.msra.mxu1 %v2031_v4 }
 0x720   :  { %2538 = vmatmul.mubr.msk.bf16.vlgmr.msra.gmra.mrb[16].mxu1 %vm870_vm3, %v2598_v21 }
 0x7f3   :  { %v2539_v50 = vpop.f32.mrb[16].mxu1 }
 0x7f4   :  { %v2127_v61 = vadd.f32 %v2539_v50, %v2118_v45  ;;  %v2082_v34 = vpop.f32.mrb[17].mxu1 }
 0x7f5   :  { %v2125_v47 = vadd.f32 %v2108_v52, %v2082_v34  ;;  %v2540_v1 = vpop.f32.mrb[18].mxu1 }
 0x7f6   :  { %v2135_v16 = vmul.f32 0.01, %v2127_v61  ;;  %v2128_v31 = vadd.f32 %v2540_v1, %v2123_v5  ;;  %v2085_v29 = vpop.f32.mrb[19].mxu1  ;;  %vm2131_vm0 = vcmp.ge.f32.partialorder %v2127_v61, 0.0 }
 0x7f7   :  { %v2133_v13 = vmul.f32 0.01, %v2125_v47  ;;  %v2126_v20 = vadd.f32 %v2113_v38, %v2085_v29  ;;  %vm2129_vm1 = vcmp.ge.f32.partialorder %v2125_v47, 0.0 }
 0x7f8   :  { %vm2132_vm4 = vcmp.ge.f32.partialorder %v2128_v31, 0.0  ;;  %v2136_v30 = vmul.f32 0.01, %v2128_v31  ;;  %v2139_v0 = vsel %vm2131_vm0, %v2127_v61, %v2135_v16 }
 0x7f9   :  { %vm2130_vm5 = vcmp.ge.f32.partialorder %v2126_v20, 0.0  ;;  %v2134_v57 = vmul.f32 0.01, %v2126_v20  ;;  %v2137_v42 = vsel %vm2129_vm1, %v2125_v47, %v2133_v13 }
 0x7fa   :  { %v2140_v43 = vsel %vm2132_vm4, %v2128_v31, %v2136_v30 }
 0x7fb   :  { %v2143_v19 = vpack.c.bf16 %v2140_v43, %v2139_v0  ;;  %v2138_v60 = vsel %vm2130_vm5, %v2126_v20, %v2134_v57 }
 0x7fc   :  { %v2142_v40 = vpack.c.bf16 %v2138_v60, %v2137_v42 }
 0x7fe   :  { %2542 = vmatpush3.bf16.msra.mxu0 %v2142_v40 }
 0x7ff   :  { %2543 = vmatprep.subr.bf16.mxu0 %v2658_v44 }
 0x802   :  { %2544 = vmatpush3.bf16.msra.mxu0 %v2143_v19 }
 0x805   :  { %2546 = vmatmul.mubr.msk.bf16.vlgmr.msra.gmra.mrb[40].mxu0 %vm870_vm3, %v2141_v54 }
 0x8d8   :  { %v2187_v22 = vpop.f32.mrb[40].mxu0 }
 0x8d9   :  { %v2188_v37 = vadd.f32 %v2187_v22, %v2148_v59  ;;  %v2547_v7 = vpop.f32.mrb[41].mxu0 }
 0x8da   :  { %v2190_v3 = vpop.f32.mrb[42].mxu0 }
 0x8db   :  { %v2548_v63 = vpop.f32.mrb[43].mxu0  ;;  %v2205_v18 = vsel %vm2193_vm6, %v2188_v37, inf  ;;  %v2194_v49 = vsel %vm2193_vm6, %v2188_v37, -inf }
 0x8dc   :  { %2206 = vmin.xlane.f32.xlu0 %v2205_v18  ;;  %2195 = vmax.xlane.f32.xlu1 %v2194_v49 }
 0x969   :  { %v2207_v46 = vpop.xlane.xlu0 %2206  ;;  %v2196_v39 = vpop.xlane.xlu1 %2195 }
 0x96a   :  { %v2208_v2 = vrot.slane %v2207_v46, 4  ;;  %v2197_v25 = vrot.slane %v2196_v39, 4 }
 0x96c   :  { %v2209_v8 = vmin.f32 %v2207_v46, %v2208_v2  ;;  %v2198_v15 = vmax.f32 %v2196_v39, %v2197_v25 }
 0x96e   :  { %v2210_v48 = vrot.slane %v2209_v8, 2  ;;  %v2199_v32 = vrot.slane %v2198_v15, 2 }
 0x970   :  { %v2211_v11 = vmin.f32 %v2209_v8, %v2210_v48  ;;  %v2200_v14 = vmax.f32 %v2198_v15, %v2199_v32 }
 0x972   :  { %v2201_v56 = vrot.slane %v2200_v14, 1  ;;  %v2212_v26 = vrot.slane %v2211_v11, 1 }
 0x974   :  { %v2202_v27 = vmax.f32 %v2200_v14, %v2201_v56  ;;  %v2213_v24 = vmin.f32 %v2211_v11, %v2212_v26 }
 0x976   :  { %2558 = vpush %v2202_v27 }
 0x977   :  { %2560 = vpush %v2213_v24 }
 0x9a7   :  { %s2559_s11 = spop %2558 }
 0x9a8   :  { %v2204_v51 = vstv %s2559_s11  ;;  %s2561_s0 = spop %2560 }
 0x9a9   :  { %v2217_v33 = vadd.f32 1e-06, %v2204_v51  ;;  %v2215_v55 = vstv %s2561_s0 }
 0x9aa   :  { %v2216_v6 = vsub.f32 %v2188_v37, %v2215_v55 }
 0x9ab   :  { %v2218_v10 = vsub.f32 %v2217_v33, %v2215_v55 }
 0x9ad   :  { %2627 = vrcp.f32 %v2218_v10 }
 0x9b7   :  { %v2628_v35 = vpop.eup %2627 }
 0x9b8   :  { %v2220_v28 = vmul.f32 %v2628_v35, %v2216_v6 }
 0x9ba   :  { %2221 = vst.msk [vmem:[#allocation2] sm:$0xf] %vm2193_vm6, %v2220_v28 }
 0x9bb   :  { %2643 = shalt.err (!%p2640_p4)
}
 0x9bc   :  { %s2644_s2 = scalar_lea.hbm %s3441_s13, 64 }
 0x9bd   :  { %p2645_p5 = scmp.ne.s32.totalorder %s3441_s13, %s2644_s2  ;;  %p2648_p6 = scmp.lt.u32.totalorder %s2644_s2, %s3441_s13 }
 0x9bf   :  { %p2650_p7 = pnand %p2648_p6, %p2645_p5 }
 0x9c1   :  { %2653 = shalt.err (!%p2650_p7)
}
 0x9c2   :  { %2231 = dma.vmem_to_hbm [thread:$0]  %s2229_s18, 64, %s3441_s13, [#allocation3]  }
 0x9c3   :  { %2654 = dma.done.wait [#allocation3], 64  }
 0x9c4   :  { %2655 = vsyncadd [#allocation3], 4294967232 }
 0x9c5   :  { %2235 = vsyncpa [#allocation3], 1 }

</bundles_post_ra>
